<compile_context>
chip_gen: v5e
topology: v5e:2x2
jax: 0.10.0
libtpu: 0.0.40
codegen_flags: <defaults>
</compile_context>

<pallas_src>
import jax
import jax.numpy as jnp
from jax.experimental import pallas as pl
from jax.experimental.pallas import tpu as pltpu


_LANE = 512            # last dim: multiple of 128 -> lane-dense, unmasked vst
_BLOCK_ROWS = 512      # second-to-last: multiple of 8
_BLOCK_ELEMS = _LANE * _BLOCK_ROWS        # 262144 elems = 1 MiB f32 per buffer
_PALLAS_MIN_ELEMS = 64 * 1024             # below this, let XLA fuse abs+mul


def _abs_scale_kernel(x_ref, o_ref):
    # out = ones_like(v2) * |x1| * 5  ==  5 * |x1|   (single VPU abs + mul)
    o_ref[...] = 5.0 * jnp.abs(x_ref[...])


def model_forward(x1, weight, bias):
    """Equivalent of Model.forward.  weight/bias only constrain the output
    shape (via ones_like(v2)); they do not affect the returned values."""
    B, D, S = x1.shape
    out_feat = weight.shape[0]
    # The torch module only type-checks when ones_like(v2) (B,S,out) broadcasts
    # against |x1| (B,D,S): the square case.
    assert S == D and out_feat == S, (
        "Model.forward only type-checks when S == D == out_features")

    out_shape = (B, S, out_feat)
    n = B * D * S

    # Tiny inputs: pallas_call fixed launch/DMA overhead dwarfs a few-element
    # VPU op; XLA fuses abs+mul for free.
    if n < _PALLAS_MIN_ELEMS:
        return (5.0 * jnp.abs(x1)).reshape(out_shape)

    # Flatten, pad to a whole number of (512, 512) blocks, present as a
    # lane-dense 2-D slab so every (8,128) vreg tile carries useful data.
    x_flat = x1.reshape(-1)
    pad = (-n) % _BLOCK_ELEMS
    if pad:
        x_flat = jnp.pad(x_flat, (0, pad))
    n_padded = n + pad
    rows = n_padded // _LANE
    x_slab = x_flat.reshape(rows, _LANE)

    grid = (rows // _BLOCK_ROWS,)

    out_slab = pl.pallas_call(
        _abs_scale_kernel,
        out_shape=jax.ShapeDtypeStruct((rows, _LANE), x1.dtype),
        grid=grid,
        in_specs=[pl.BlockSpec((_BLOCK_ROWS, _LANE), lambda i: (i, 0))],
        out_specs=pl.BlockSpec((_BLOCK_ROWS, _LANE), lambda i: (i, 0)),
        input_output_aliases={0: 0},
        compiler_params=pltpu.CompilerParams(
            dimension_semantics=("parallel",)),
    )(x_slab)

    # Output logical shape per the module: ones_like(v2) -> (B, S, out_feat).
    return out_slab.reshape(-1)[:n].reshape(out_shape)


if __name__ == "__main__":
    key = jax.random.PRNGKey(0)
    kx, kw, kb, kx2, kw2, kb2, kx3 = jax.random.split(key, 7)

    # --- 1) Spec-sized case: x1 ~ (1, 2, 2), Linear(2, 2)  (XLA fast path) ---
    x1_small = jax.random.normal(kx, (1, 2, 2), dtype=jnp.float32)
    bound = 1.0 / (2.0 ** 0.5)
    w_small = jax.random.uniform(kw, (2, 2), minval=-bound, maxval=bound,
                                 dtype=jnp.float32)
    b_small = jax.random.uniform(kb, (2,), minval=-bound, maxval=bound,
                                 dtype=jnp.float32)
    out_small = jax.block_until_ready(model_forward(x1_small, w_small, b_small))
    ref_small = 5.0 * jnp.abs(x1_small)
    assert out_small.shape == (1, 2, 2)
    assert jnp.allclose(out_small, ref_small, atol=1e-6)

    # --- 2) Larger square case exercising the tiled Pallas path (grid of 2) ---
    B, D = 8, 256                      # n = 524288 -> two (512, 512) blocks
    x1_big = jax.random.normal(kx2, (B, D, D), dtype=jnp.float32)
    bound = 1.0 / (float(D) ** 0.5)
    w_big = jax.random.uniform(kw2, (D, D), minval=-bound, maxval=bound,
                               dtype=jnp.float32)
    b_big = jax.random.uniform(kb2, (D,), minval=-bound, maxval=bound,
                               dtype=jnp.float32)
    out_big = jax.block_until_ready(model_forward(x1_big, w_big, b_big))
    ref_big = 5.0 * jnp.abs(x1_big)
    assert out_big.shape == (B, D, D)
    assert jnp.allclose(out_big, ref_big, atol=1e-6)

    # --- 3) Non-block-divisible case exercising the padding path ---
    x1_odd = jax.random.normal(kx3, (2, 200, 200), dtype=jnp.float32)
    w_odd = jnp.zeros((200, 200), dtype=jnp.float32)
    b_odd = jnp.zeros((200,), dtype=jnp.float32)
    out_odd = jax.block_until_ready(model_forward(x1_odd, w_odd, b_odd))
    ref_odd = 5.0 * jnp.abs(x1_odd)
    assert out_odd.shape == (2, 200, 200)
    assert jnp.allclose(out_odd, ref_odd, atol=1e-6)

    print("KERNEL_OK")
</pallas_src>

<mosaic_0001>
module attributes {stable_mosaic.version = 11 : i64} {
  func.func @_abs_scale_kernel(%arg0: i32, %arg1: memref<512x512xf32, #tpu.memory_space<vmem>>, %arg2: memref<512x512xf32, #tpu.memory_space<vmem>>) attributes {dimension_semantics = [#tpu.dimension_semantics<parallel>], iteration_bounds = array<i64: 2>, scalar_prefetch = 0 : i64, scratch_operands = 0 : i64, tpu.core_type = #tpu.core_type<tc>, window_params = [{transform_indices = @transform_0, window_bounds = array<i64: 512, 512>}, {transform_indices = @transform_1, window_bounds = array<i64: 512, 512>}]} {
    %c0 = arith.constant 0 : index
    %c0_0 = arith.constant 0 : index
    %0 = vector.load %arg1[%c0, %c0_0] : memref<512x512xf32, #tpu.memory_space<vmem>>, vector<512x512xf32>
    %1 = math.absf %0 : vector<512x512xf32>
    %cst = arith.constant 5.000000e+00 : f32
    %2 = vector.broadcast %cst : f32 to vector<512x512xf32>
    %3 = arith.mulf %2, %1 : vector<512x512xf32>
    %c0_1 = arith.constant 0 : index
    %c0_2 = arith.constant 0 : index
    %4 = vector.load %arg2[%c0_1, %c0_2] : memref<512x512xf32, #tpu.memory_space<vmem>>, vector<512x512xf32>
    tpu.vector_store %arg2[%c0_1, %c0_2], %3 {strides = array<i32>} : memref<512x512xf32, #tpu.memory_space<vmem>>, vector<512x512xf32>,
    return
  }
  func.func @transform_0(%arg0: i32) -> (i32, i32) {
    %c0_i32 = arith.constant 0 : i32
    %c0_i32_0 = arith.constant 0 : i32
    return %arg0, %c0_i32 : i32, i32
  }
  func.func @transform_1(%arg0: i32) -> (i32, i32) {
    %c0_i32 = arith.constant 0 : i32
    %c0_i32_0 = arith.constant 0 : i32
    return %arg0, %c0_i32 : i32, i32
  }
}

</mosaic_0001>

<bundles_post_ra>
// kernel: tpu_custom_call.1
= control target key start
LH: loop header
LB: loop body
LE: loop exit
PB: predicated region body
PF: predicated region fallthrough
CT: control target
= control target key end

     0   :  { %6 = vsyncpa [#allocation3], 0  ;;  %s2080_s0 = inlined_call_operand.hbm [shape: f32[1024,512], index: 0, kind: input, shape index: {}, may-alias: {0,1}]   ;;  %s2081_s1 = inlined_call_operand.hbm [shape: f32[1024,512], index: 1, kind: output, shape index: {}, may-alias: {0,1}]  }
   0x1   :  { %8 = vsyncpa [#allocation3 + $0x1], 0 }
   0x2   :  { %9 = vsyncpa [#allocation4], 0 }
   0x3   :  { %11 = vsyncpa [#allocation4 + $0x1], 0  ;;  %s1436_s6 = smov 0   ;;  %s1438_s7 = smov 0  }
   0x4   :  { %s1440_s8 = smov 0   ;;  %s1442_s9 = smov 0  }
   0x5 LB: > { %s1457_s10 = sadd.s32 4294967295, %s1420_s9   ;;  %s1254_s11 = sadd.s32 4294967294, %s1420_s9   ;;  %s1420_s9 = sphi %s1442_s9, %s2091_s9   ;;  %s1416_s8 = sphi %s1440_s8, %s2090_s8   ;;  %s1412_s7 = sphi %s1438_s7, %s2089_s7   ;;  %s1408_s6 = sphi %s1436_s6, %s2088_s6  }
   0x6   : > { %s1461_s12 = sadd.s32 1, %s1420_s9   ;;  %s24_s13 = sadd.s32 1, %s1416_s8 }
   0x7   : > { %s21_s14 = ssub.s32 %s1420_s9, %s1461_s12  ;;  %p31_p0 = scmp.ne.s32.totalorder %s1416_s8, %s1412_s7 }
   0x8   : > { %p22_p1 = scmp.eq.s32.totalorder %s21_s14, 0  ;;  %p32_p2 = scmp.eq.s32.totalorder %s1420_s9, 0 }
   0x9   : > { %p37_p3 = scmp.ne.s32.totalorder %s1412_s7, %s1408_s6  ;;  %p38_p4 = scmp.eq.s32.totalorder %s1457_s10, 0 }
   0xa   : > { %s1473_s15 = scalar_select %p22_p1, %s1416_s8, %s24_s13  }
   0xb   : > { %p1475_p5 = por %p32_p2, %p31_p0  ;;  %p1479_p6 = por %p38_p4, %p37_p3 }
   0xc   : > { %p61_p7 = scmp.eq.s32.totalorder %s1457_s10, 1  ;;  %p67_p8 = scmp.eq.s32.totalorder %s1254_s11, 1 }
   0xd   : > { %p1286_p10 = scmp.lt.s32.totalorder %s1420_s9, 2  ;;  %s87_s20 = sand.u32 1, %s1416_s8  }
   0xe   : > { %p1486_p11 = por %p61_p7, %p31_p0  ;;  %p1490_p12 = por %p67_p8, %p37_p3 }
   0xf   : > { %s1271_s21 = sshll.u32 %s1420_s9, 11  ;;  %s1257_s22 = sshll.u32 %s87_s20, 11 }
  0x10   : > { %s97_s25 = scalar_lea.hbm %s2080_s0, %s1271_s21  ;;  %s91_s27 = scalar_lea.vmem [#allocation2], %s1257_s22 }
  0x11   : > { %s98_s26 = sshll.u32 %s97_s25, 4  ;;  %s100_s28 = sshll.u32 %s91_s27, 4  ;;  %s99_s26 = int_to_ptr.hbm [resolvable:$true] %s98_s26  ;;  %s101_s28 = int_to_ptr.vmem [resolvable:$true] %s100_s28 }
  0x12   : > { %p1501_p13 = pnand %p1286_p10, %p1475_p5  ;;  %p1261_p0 = scmp.ge.s32.totalorder %s1420_s9, 1 }
  0x13   : > { %p108_p1 = scmp.lt.s32.totalorder %s1420_s9, 3  ;;  %s88_s30 = scalar_lea.sflag [#allocation3], %s87_s20 }
  0x14   : > { %s1324_s2 = sshra.s32 %s99_s26, 4  ;;  %p1328_p3 = pneg %p1501_p13  ;;  %s1325_s2 = int_to_ptr.hbm [resolvable:$true] %s1324_s2 }
  0x15   : > { %s1326_s3 = scalar_lea.hbm %s1325_s2, 2048  ;;  %s1331_s11 = scalar_lea.hbm %s2080_s0, 4096 }
  0x16   : > { %p1327_p2 = scmp.ne.s32.totalorder %s1325_s2, %s1326_s3  ;;  %p1332_p5 = scmp.lt.s32.totalorder %s1325_s2, %s2080_s0 }
  0x17   : > { %p1333_p8 = scmp.lt.s32.totalorder %s1331_s11, %s1326_s3 }
  0x18   : > { %p1329_p4 = pnand %p1328_p3, %p1327_p2 }
  0x19   : > { %p1334_p10 = por %p1333_p8, %p1332_p5 }
  0x1a   : > { %p1330_p7 = pneg %p1329_p4 }
  0x1c   : > { %p1335_p9 = pnand %p1334_p10, %p1330_p7 }
  0x1e   : > { %1338 = shalt.err (!%p1335_p9)
}
  0x1f   : > { %s1422_s16 = smov 512   ;;  %s1423_s20 = smov 32  }
  0x20   : > { %1281 = dma.hbm_to_vmem [thread:$0]  (!%p1501_p13), %s99_s26, 32768, %s101_s28, %s88_s30, %s1422_s16, %s1422_s16, %s1423_s20  }
  0x21   : > { %p109_p2 = pnand %p1261_p0, %p108_p1 }
  0x22   : > { %s1522_s21 = sand.u32 (!%p109_p2), 1, %s1412_s7  }
  0x23   : > { %112 = sbr.rel (%p109_p2) target bundleno = 305 (0x131), region = 24  ;;  %s1262_s22 = sshll.u32 (!%p109_p2), %s1522_s21, 11 }
  0x24   : > { %s115_s23 = scalar_lea.sflag (!%p109_p2), [#allocation3], %s1522_s21  ;;  %s1526_s24 = scalar_lea.vmem (!%p109_p2), [#allocation2], %s1262_s22 }
  0x28   : > { %1399 = dma.done.wait (%p1479_p6), %s115_s23, 32768  }
  0x29   : > { %1401 = vsyncadd (%p1479_p6), %s115_s23, 4294934528  ;;  %v140_v0 = vld [vmem:[%s1526_s24] sm:$0xff]  ;;  %v141_v1 = vld [vmem:[%s1526_s24 + $0x8] sm:$0xff]  ;;  %s1539_s17 = scalar_lea.vmem [#allocation5], %s1262_s22  ;;  %s1273_s25 = sshll.u32 %s1457_s10, 11 }
  0x2a   : > { %v142_v2 = vld [vmem:[%s1526_s24 + $0x10] sm:$0xff]  ;;  %v396_v3 = vand.u32 2147483647, %v140_v0  ;;  %v397_v4 = vand.u32 2147483647, %v141_v1  ;;  %v143_v6 = vld [vmem:[%s1526_s24 + $0x18] sm:$0xff]  ;;  %s1177_s28 = scalar_lea.hbm %s2081_s1, %s1273_s25 }
  0x2b   : > { %v398_v5 = vand.u32 2147483647, %v142_v2  ;;  %v144_v7 = vld [vmem:[%s1526_s24 + $0x20] sm:$0xff]  ;;  %v145_v8 = vld [vmem:[%s1526_s24 + $0x28] sm:$0xff]  ;;  %v399_v12 = vand.u32 2147483647, %v143_v6 }
  0x2c   : > { %v652_v9 = vmul.f32 5.0, %v396_v3  ;;  %v653_v10 = vmul.f32 5.0, %v397_v4  ;;  %v146_v13 = vld [vmem:[%s1526_s24 + $0x30] sm:$0xff]  ;;  %v400_v14 = vand.u32 2147483647, %v144_v7  ;;  %v147_v18 = vld [vmem:[%s1526_s24 + $0x38] sm:$0xff] }
  0x2d   : > { %v654_v11 = vmul.f32 5.0, %v398_v5  ;;  %v401_v15 = vand.u32 2147483647, %v145_v8  ;;  %v402_v16 = vand.u32 2147483647, %v146_v13  ;;  %v655_v17 = vmul.f32 5.0, %v399_v12 }
  0x2e   : > { %908 = vst [vmem:[%s1539_s17] sm:$0xff] %v652_v9  ;;  %v148_v19 = vld [vmem:[%s1526_s24 + $0x40] sm:$0xff]  ;;  %v149_v20 = vld [vmem:[%s1526_s24 + $0x48] sm:$0xff]  ;;  %v656_v21 = vmul.f32 5.0, %v400_v14  ;;  %v403_v24 = vand.u32 2147483647, %v147_v18  ;;  %v150_v27 = vld [vmem:[%s1526_s24 + $0x50] sm:$0xff] }
  0x2f   : > { %909 = vst [vmem:[%s1539_s17 + $0x8] sm:$0xff] %v653_v10  ;;  %v657_v22 = vmul.f32 5.0, %v401_v15  ;;  %v658_v23 = vmul.f32 5.0, %v402_v16  ;;  %v404_v25 = vand.u32 2147483647, %v148_v19  ;;  %v151_v30 = vld [vmem:[%s1526_s24 + $0x58] sm:$0xff] }
  0x30   : > { %910 = vst [vmem:[%s1539_s17 + $0x10] sm:$0xff] %v654_v11  ;;  %v405_v26 = vand.u32 2147483647, %v149_v20  ;;  %v659_v28 = vmul.f32 5.0, %v403_v24  ;;  %v406_v29 = vand.u32 2147483647, %v150_v27 }
  0x31   : > { %911 = vst [vmem:[%s1539_s17 + $0x18] sm:$0xff] %v655_v17  ;;  %v152_v31 = vld [vmem:[%s1526_s24 + $0x60] sm:$0xff]  ;;  %v660_v32 = vmul.f32 5.0, %v404_v25  ;;  %v407_v33 = vand.u32 2147483647, %v151_v30  ;;  %v153_v34 = vld [vmem:[%s1526_s24 + $0x68] sm:$0xff] }
  0x32   : > { %912 = vst [vmem:[%s1539_s17 + $0x20] sm:$0xff] %v656_v21  ;;  %v661_v35 = vmul.f32 5.0, %v405_v26  ;;  %v408_v36 = vand.u32 2147483647, %v152_v31  ;;  %v409_v37 = vand.u32 2147483647, %v153_v34 }
  0x33   : > { %913 = vst [vmem:[%s1539_s17 + $0x28] sm:$0xff] %v657_v22  ;;  %v662_v38 = vmul.f32 5.0, %v406_v29  ;;  %v154_v39 = vld [vmem:[%s1526_s24 + $0x70] sm:$0xff]  ;;  %v155_v40 = vld [vmem:[%s1526_s24 + $0x78] sm:$0xff]  ;;  %v156_v41 = vld [vmem:[%s1526_s24 + $0x80] sm:$0xff]  ;;  %v663_v42 = vmul.f32 5.0, %v407_v33 }
  0x34   : > { %914 = vst [vmem:[%s1539_s17 + $0x30] sm:$0xff] %v658_v23  ;;  %v664_v43 = vmul.f32 5.0, %v408_v36  ;;  %v410_v44 = vand.u32 2147483647, %v154_v39  ;;  %v157_v45 = vld [vmem:[%s1526_s24 + $0x88] sm:$0xff]  ;;  %v158_v48 = vld [vmem:[%s1526_s24 + $0x90] sm:$0xff] }
  0x35   : > { %915 = vst [vmem:[%s1539_s17 + $0x38] sm:$0xff] %v659_v28  ;;  %v411_v46 = vand.u32 2147483647, %v155_v40  ;;  %v412_v47 = vand.u32 2147483647, %v156_v41  ;;  %v665_v49 = vmul.f32 5.0, %v409_v37 }
  0x36   : > { %916 = vst [vmem:[%s1539_s17 + $0x40] sm:$0xff] %v660_v32  ;;  %v666_v50 = vmul.f32 5.0, %v410_v44  ;;  %v413_v51 = vand.u32 2147483647, %v157_v45  ;;  %v414_v52 = vand.u32 2147483647, %v158_v48 }
  0x37   : > { %917 = vst [vmem:[%s1539_s17 + $0x48] sm:$0xff] %v661_v35  ;;  %v159_v53 = vld [vmem:[%s1526_s24 + $0x98] sm:$0xff]  ;;  %v160_v54 = vld [vmem:[%s1526_s24 + $0xa0] sm:$0xff]  ;;  %v161_v55 = vld [vmem:[%s1526_s24 + $0xa8] sm:$0xff]  ;;  %v667_v56 = vmul.f32 5.0, %v411_v46  ;;  %v668_v59 = vmul.f32 5.0, %v412_v47 }
  0x38   : > { %918 = vst [vmem:[%s1539_s17 + $0x50] sm:$0xff] %v662_v38  ;;  %v415_v57 = vand.u32 2147483647, %v159_v53  ;;  %v162_v58 = vld [vmem:[%s1526_s24 + $0xb0] sm:$0xff]  ;;  %v416_v60 = vand.u32 2147483647, %v160_v54 }
  0x39   : > { %919 = vst [vmem:[%s1539_s17 + $0x58] sm:$0xff] %v663_v42  ;;  %v163_v61 = vld [vmem:[%s1526_s24 + $0xb8] sm:$0xff]  ;;  %v669_v62 = vmul.f32 5.0, %v413_v51  ;;  %v417_v63 = vand.u32 2147483647, %v161_v55  ;;  %v670_v0 = vmul.f32 5.0, %v414_v52 }
  0x3a   : > { %920 = vst [vmem:[%s1539_s17 + $0x60] sm:$0xff] %v664_v43  ;;  %v418_v1 = vand.u32 2147483647, %v162_v58  ;;  %v164_v2 = vld [vmem:[%s1526_s24 + $0xc0] sm:$0xff]  ;;  %v165_v3 = vld [vmem:[%s1526_s24 + $0xc8] sm:$0xff]  ;;  %v671_v4 = vmul.f32 5.0, %v415_v57 }
  0x3b   : > { %921 = vst [vmem:[%s1539_s17 + $0x68] sm:$0xff] %v665_v49  ;;  %v419_v5 = vand.u32 2147483647, %v163_v61  ;;  %v166_v6 = vld [vmem:[%s1526_s24 + $0xd0] sm:$0xff]  ;;  %v672_v7 = vmul.f32 5.0, %v416_v60  ;;  %v167_v9 = vld [vmem:[%s1526_s24 + $0xd8] sm:$0xff] }
  0x3c   : > { %922 = vst [vmem:[%s1539_s17 + $0x70] sm:$0xff] %v666_v50  ;;  %v420_v8 = vand.u32 2147483647, %v164_v2  ;;  %v673_v10 = vmul.f32 5.0, %v417_v63  ;;  %v421_v11 = vand.u32 2147483647, %v165_v3 }
  0x3d   : > { %923 = vst [vmem:[%s1539_s17 + $0x78] sm:$0xff] %v667_v56  ;;  %v168_v12 = vld [vmem:[%s1526_s24 + $0xe0] sm:$0xff]  ;;  %v674_v13 = vmul.f32 5.0, %v418_v1  ;;  %v422_v14 = vand.u32 2147483647, %v166_v6  ;;  %v169_v15 = vld [vmem:[%s1526_s24 + $0xe8] sm:$0xff] }
  0x3e   : > { %924 = vst [vmem:[%s1539_s17 + $0x80] sm:$0xff] %v668_v59  ;;  %v675_v16 = vmul.f32 5.0, %v419_v5  ;;  %v423_v17 = vand.u32 2147483647, %v167_v9  ;;  %v170_v18 = vld [vmem:[%s1526_s24 + $0xf0] sm:$0xff]  ;;  %v676_v19 = vmul.f32 5.0, %v420_v8 }
  0x3f   : > { %925 = vst [vmem:[%s1539_s17 + $0x88] sm:$0xff] %v669_v62  ;;  %v424_v20 = vand.u32 2147483647, %v168_v12  ;;  %v171_v21 = vld [vmem:[%s1526_s24 + $0xf8] sm:$0xff]  ;;  %v677_v22 = vmul.f32 5.0, %v421_v11  ;;  %v172_v24 = vld [vmem:[%s1526_s24 + $0x100] sm:$0xff] }
  0x40   : > { %926 = vst [vmem:[%s1539_s17 + $0x90] sm:$0xff] %v670_v0  ;;  %v425_v23 = vand.u32 2147483647, %v169_v15  ;;  %v678_v25 = vmul.f32 5.0, %v422_v14  ;;  %v426_v26 = vand.u32 2147483647, %v170_v18 }
  0x41   : > { %927 = vst [vmem:[%s1539_s17 + $0x98] sm:$0xff] %v671_v4  ;;  %v173_v27 = vld [vmem:[%s1526_s24 + $0x108] sm:$0xff]  ;;  %v679_v28 = vmul.f32 5.0, %v423_v17  ;;  %v427_v29 = vand.u32 2147483647, %v171_v21  ;;  %v174_v30 = vld [vmem:[%s1526_s24 + $0x110] sm:$0xff] }
  0x42   : > { %928 = vst [vmem:[%s1539_s17 + $0xa0] sm:$0xff] %v672_v7  ;;  %v680_v31 = vmul.f32 5.0, %v424_v20  ;;  %v428_v32 = vand.u32 2147483647, %v172_v24  ;;  %v175_v33 = vld [vmem:[%s1526_s24 + $0x118] sm:$0xff]  ;;  %v681_v34 = vmul.f32 5.0, %v425_v23 }
  0x43   : > { %929 = vst [vmem:[%s1539_s17 + $0xa8] sm:$0xff] %v673_v10  ;;  %v429_v35 = vand.u32 2147483647, %v173_v27  ;;  %v176_v36 = vld [vmem:[%s1526_s24 + $0x120] sm:$0xff]  ;;  %v682_v37 = vmul.f32 5.0, %v426_v26  ;;  %v177_v39 = vld [vmem:[%s1526_s24 + $0x128] sm:$0xff] }
  0x44   : > { %930 = vst [vmem:[%s1539_s17 + $0xb0] sm:$0xff] %v674_v13  ;;  %v430_v38 = vand.u32 2147483647, %v174_v30  ;;  %v683_v40 = vmul.f32 5.0, %v427_v29  ;;  %v431_v41 = vand.u32 2147483647, %v175_v33 }
  0x45   : > { %931 = vst [vmem:[%s1539_s17 + $0xb8] sm:$0xff] %v675_v16  ;;  %v178_v42 = vld [vmem:[%s1526_s24 + $0x130] sm:$0xff]  ;;  %v684_v43 = vmul.f32 5.0, %v428_v32  ;;  %v432_v44 = vand.u32 2147483647, %v176_v36  ;;  %v179_v45 = vld [vmem:[%s1526_s24 + $0x138] sm:$0xff] }
  0x46   : > { %932 = vst [vmem:[%s1539_s17 + $0xc0] sm:$0xff] %v676_v19  ;;  %v685_v46 = vmul.f32 5.0, %v429_v35  ;;  %v433_v47 = vand.u32 2147483647, %v177_v39  ;;  %v180_v48 = vld [vmem:[%s1526_s24 + $0x140] sm:$0xff]  ;;  %v686_v49 = vmul.f32 5.0, %v430_v38 }
  0x47   : > { %933 = vst [vmem:[%s1539_s17 + $0xc8] sm:$0xff] %v677_v22  ;;  %v434_v50 = vand.u32 2147483647, %v178_v42  ;;  %v181_v51 = vld [vmem:[%s1526_s24 + $0x148] sm:$0xff]  ;;  %v687_v52 = vmul.f32 5.0, %v431_v41  ;;  %v182_v54 = vld [vmem:[%s1526_s24 + $0x150] sm:$0xff] }
  0x48   : > { %934 = vst [vmem:[%s1539_s17 + $0xd0] sm:$0xff] %v678_v25  ;;  %v435_v53 = vand.u32 2147483647, %v179_v45  ;;  %v688_v55 = vmul.f32 5.0, %v432_v44  ;;  %v436_v56 = vand.u32 2147483647, %v180_v48 }
  0x49   : > { %935 = vst [vmem:[%s1539_s17 + $0xd8] sm:$0xff] %v679_v28  ;;  %v183_v57 = vld [vmem:[%s1526_s24 + $0x158] sm:$0xff]  ;;  %v689_v58 = vmul.f32 5.0, %v433_v47  ;;  %v437_v59 = vand.u32 2147483647, %v181_v51  ;;  %v184_v60 = vld [vmem:[%s1526_s24 + $0x160] sm:$0xff] }
  0x4a   : > { %936 = vst [vmem:[%s1539_s17 + $0xe0] sm:$0xff] %v680_v31  ;;  %v690_v61 = vmul.f32 5.0, %v434_v50  ;;  %v438_v62 = vand.u32 2147483647, %v182_v54  ;;  %v185_v63 = vld [vmem:[%s1526_s24 + $0x168] sm:$0xff]  ;;  %v691_v0 = vmul.f32 5.0, %v435_v53 }
  0x4b   : > { %937 = vst [vmem:[%s1539_s17 + $0xe8] sm:$0xff] %v681_v34  ;;  %v439_v1 = vand.u32 2147483647, %v183_v57  ;;  %v186_v2 = vld [vmem:[%s1526_s24 + $0x170] sm:$0xff]  ;;  %v692_v3 = vmul.f32 5.0, %v436_v56  ;;  %v187_v5 = vld [vmem:[%s1526_s24 + $0x178] sm:$0xff] }
  0x4c   : > { %938 = vst [vmem:[%s1539_s17 + $0xf0] sm:$0xff] %v682_v37  ;;  %v440_v4 = vand.u32 2147483647, %v184_v60  ;;  %v693_v6 = vmul.f32 5.0, %v437_v59  ;;  %v441_v7 = vand.u32 2147483647, %v185_v63 }
  0x4d   : > { %939 = vst [vmem:[%s1539_s17 + $0xf8] sm:$0xff] %v683_v40  ;;  %v188_v8 = vld [vmem:[%s1526_s24 + $0x180] sm:$0xff]  ;;  %v694_v9 = vmul.f32 5.0, %v438_v62  ;;  %v442_v10 = vand.u32 2147483647, %v186_v2  ;;  %v189_v11 = vld [vmem:[%s1526_s24 + $0x188] sm:$0xff] }
  0x4e   : > { %940 = vst [vmem:[%s1539_s17 + $0x100] sm:$0xff] %v684_v43  ;;  %v695_v12 = vmul.f32 5.0, %v439_v1  ;;  %v443_v13 = vand.u32 2147483647, %v187_v5  ;;  %v190_v14 = vld [vmem:[%s1526_s24 + $0x190] sm:$0xff]  ;;  %v696_v15 = vmul.f32 5.0, %v440_v4 }
  0x4f   : > { %941 = vst [vmem:[%s1539_s17 + $0x108] sm:$0xff] %v685_v46  ;;  %v444_v16 = vand.u32 2147483647, %v188_v8  ;;  %v191_v17 = vld [vmem:[%s1526_s24 + $0x198] sm:$0xff]  ;;  %v697_v18 = vmul.f32 5.0, %v441_v7  ;;  %v192_v20 = vld [vmem:[%s1526_s24 + $0x1a0] sm:$0xff] }
  0x50   : > { %942 = vst [vmem:[%s1539_s17 + $0x110] sm:$0xff] %v686_v49  ;;  %v445_v19 = vand.u32 2147483647, %v189_v11  ;;  %v698_v21 = vmul.f32 5.0, %v442_v10  ;;  %v446_v22 = vand.u32 2147483647, %v190_v14 }
  0x51   : > { %943 = vst [vmem:[%s1539_s17 + $0x118] sm:$0xff] %v687_v52  ;;  %v193_v23 = vld [vmem:[%s1526_s24 + $0x1a8] sm:$0xff]  ;;  %v699_v24 = vmul.f32 5.0, %v443_v13  ;;  %v447_v25 = vand.u32 2147483647, %v191_v17  ;;  %v194_v26 = vld [vmem:[%s1526_s24 + $0x1b0] sm:$0xff] }
  0x52   : > { %944 = vst [vmem:[%s1539_s17 + $0x120] sm:$0xff] %v688_v55  ;;  %v700_v27 = vmul.f32 5.0, %v444_v16  ;;  %v448_v28 = vand.u32 2147483647, %v192_v20  ;;  %v195_v29 = vld [vmem:[%s1526_s24 + $0x1b8] sm:$0xff]  ;;  %v701_v30 = vmul.f32 5.0, %v445_v19 }
  0x53   : > { %945 = vst [vmem:[%s1539_s17 + $0x128] sm:$0xff] %v689_v58  ;;  %v449_v31 = vand.u32 2147483647, %v193_v23  ;;  %v196_v32 = vld [vmem:[%s1526_s24 + $0x1c0] sm:$0xff]  ;;  %v702_v33 = vmul.f32 5.0, %v446_v22  ;;  %v197_v35 = vld [vmem:[%s1526_s24 + $0x1c8] sm:$0xff] }
  0x54   : > { %946 = vst [vmem:[%s1539_s17 + $0x130] sm:$0xff] %v690_v61  ;;  %v450_v34 = vand.u32 2147483647, %v194_v26  ;;  %v703_v36 = vmul.f32 5.0, %v447_v25  ;;  %v451_v37 = vand.u32 2147483647, %v195_v29 }
  0x55   : > { %947 = vst [vmem:[%s1539_s17 + $0x138] sm:$0xff] %v691_v0  ;;  %v198_v38 = vld [vmem:[%s1526_s24 + $0x1d0] sm:$0xff]  ;;  %v704_v39 = vmul.f32 5.0, %v448_v28  ;;  %v452_v40 = vand.u32 2147483647, %v196_v32  ;;  %v199_v41 = vld [vmem:[%s1526_s24 + $0x1d8] sm:$0xff] }
  0x56   : > { %948 = vst [vmem:[%s1539_s17 + $0x140] sm:$0xff] %v692_v3  ;;  %v705_v42 = vmul.f32 5.0, %v449_v31  ;;  %v453_v43 = vand.u32 2147483647, %v197_v35  ;;  %v200_v44 = vld [vmem:[%s1526_s24 + $0x1e0] sm:$0xff]  ;;  %v706_v45 = vmul.f32 5.0, %v450_v34 }
  0x57   : > { %949 = vst [vmem:[%s1539_s17 + $0x148] sm:$0xff] %v693_v6  ;;  %v454_v46 = vand.u32 2147483647, %v198_v38  ;;  %v201_v47 = vld [vmem:[%s1526_s24 + $0x1e8] sm:$0xff]  ;;  %v707_v48 = vmul.f32 5.0, %v451_v37  ;;  %v202_v50 = vld [vmem:[%s1526_s24 + $0x1f0] sm:$0xff] }
  0x58   : > { %950 = vst [vmem:[%s1539_s17 + $0x150] sm:$0xff] %v694_v9  ;;  %v455_v49 = vand.u32 2147483647, %v199_v41  ;;  %v708_v51 = vmul.f32 5.0, %v452_v40  ;;  %v456_v52 = vand.u32 2147483647, %v200_v44 }
  0x59   : > { %951 = vst [vmem:[%s1539_s17 + $0x158] sm:$0xff] %v695_v12  ;;  %v203_v53 = vld [vmem:[%s1526_s24 + $0x1f8] sm:$0xff]  ;;  %v709_v54 = vmul.f32 5.0, %v453_v43  ;;  %v457_v55 = vand.u32 2147483647, %v201_v47  ;;  %v204_v56 = vld [vmem:[%s1526_s24 + $0x200] sm:$0xff] }
  0x5a   : > { %952 = vst [vmem:[%s1539_s17 + $0x160] sm:$0xff] %v696_v15  ;;  %v710_v57 = vmul.f32 5.0, %v454_v46  ;;  %v458_v58 = vand.u32 2147483647, %v202_v50  ;;  %v205_v59 = vld [vmem:[%s1526_s24 + $0x208] sm:$0xff]  ;;  %v711_v60 = vmul.f32 5.0, %v455_v49 }
  0x5b   : > { %953 = vst [vmem:[%s1539_s17 + $0x168] sm:$0xff] %v697_v18  ;;  %v459_v61 = vand.u32 2147483647, %v203_v53  ;;  %v206_v62 = vld [vmem:[%s1526_s24 + $0x210] sm:$0xff]  ;;  %v712_v63 = vmul.f32 5.0, %v456_v52  ;;  %v207_v1 = vld [vmem:[%s1526_s24 + $0x218] sm:$0xff] }
  0x5c   : > { %954 = vst [vmem:[%s1539_s17 + $0x170] sm:$0xff] %v698_v21  ;;  %v460_v0 = vand.u32 2147483647, %v204_v56  ;;  %v713_v2 = vmul.f32 5.0, %v457_v55  ;;  %v461_v3 = vand.u32 2147483647, %v205_v59 }
  0x5d   : > { %955 = vst [vmem:[%s1539_s17 + $0x178] sm:$0xff] %v699_v24  ;;  %v208_v4 = vld [vmem:[%s1526_s24 + $0x220] sm:$0xff]  ;;  %v714_v5 = vmul.f32 5.0, %v458_v58  ;;  %v462_v6 = vand.u32 2147483647, %v206_v62  ;;  %v209_v7 = vld [vmem:[%s1526_s24 + $0x228] sm:$0xff] }
  0x5e   : > { %956 = vst [vmem:[%s1539_s17 + $0x180] sm:$0xff] %v700_v27  ;;  %v715_v8 = vmul.f32 5.0, %v459_v61  ;;  %v463_v9 = vand.u32 2147483647, %v207_v1  ;;  %v210_v10 = vld [vmem:[%s1526_s24 + $0x230] sm:$0xff]  ;;  %v716_v11 = vmul.f32 5.0, %v460_v0 }
  0x5f   : > { %957 = vst [vmem:[%s1539_s17 + $0x188] sm:$0xff] %v701_v30  ;;  %v464_v12 = vand.u32 2147483647, %v208_v4  ;;  %v211_v13 = vld [vmem:[%s1526_s24 + $0x238] sm:$0xff]  ;;  %v717_v14 = vmul.f32 5.0, %v461_v3  ;;  %v212_v16 = vld [vmem:[%s1526_s24 + $0x240] sm:$0xff] }
  0x60   : > { %958 = vst [vmem:[%s1539_s17 + $0x190] sm:$0xff] %v702_v33  ;;  %v465_v15 = vand.u32 2147483647, %v209_v7  ;;  %v718_v17 = vmul.f32 5.0, %v462_v6  ;;  %v466_v18 = vand.u32 2147483647, %v210_v10 }
  0x61   : > { %959 = vst [vmem:[%s1539_s17 + $0x198] sm:$0xff] %v703_v36  ;;  %v213_v19 = vld [vmem:[%s1526_s24 + $0x248] sm:$0xff]  ;;  %v719_v20 = vmul.f32 5.0, %v463_v9  ;;  %v467_v21 = vand.u32 2147483647, %v211_v13  ;;  %v214_v22 = vld [vmem:[%s1526_s24 + $0x250] sm:$0xff] }
  0x62   : > { %960 = vst [vmem:[%s1539_s17 + $0x1a0] sm:$0xff] %v704_v39  ;;  %v720_v23 = vmul.f32 5.0, %v464_v12  ;;  %v468_v24 = vand.u32 2147483647, %v212_v16  ;;  %v215_v25 = vld [vmem:[%s1526_s24 + $0x258] sm:$0xff]  ;;  %v721_v26 = vmul.f32 5.0, %v465_v15 }
  0x63   : > { %961 = vst [vmem:[%s1539_s17 + $0x1a8] sm:$0xff] %v705_v42  ;;  %v469_v27 = vand.u32 2147483647, %v213_v19  ;;  %v216_v28 = vld [vmem:[%s1526_s24 + $0x260] sm:$0xff]  ;;  %v722_v29 = vmul.f32 5.0, %v466_v18  ;;  %v217_v31 = vld [vmem:[%s1526_s24 + $0x268] sm:$0xff] }
  0x64   : > { %962 = vst [vmem:[%s1539_s17 + $0x1b0] sm:$0xff] %v706_v45  ;;  %v470_v30 = vand.u32 2147483647, %v214_v22  ;;  %v723_v32 = vmul.f32 5.0, %v467_v21  ;;  %v471_v33 = vand.u32 2147483647, %v215_v25 }
  0x65   : > { %963 = vst [vmem:[%s1539_s17 + $0x1b8] sm:$0xff] %v707_v48  ;;  %v218_v34 = vld [vmem:[%s1526_s24 + $0x270] sm:$0xff]  ;;  %v724_v35 = vmul.f32 5.0, %v468_v24  ;;  %v472_v36 = vand.u32 2147483647, %v216_v28  ;;  %v219_v37 = vld [vmem:[%s1526_s24 + $0x278] sm:$0xff] }
  0x66   : > { %964 = vst [vmem:[%s1539_s17 + $0x1c0] sm:$0xff] %v708_v51  ;;  %v725_v38 = vmul.f32 5.0, %v469_v27  ;;  %v473_v39 = vand.u32 2147483647, %v217_v31  ;;  %v220_v40 = vld [vmem:[%s1526_s24 + $0x280] sm:$0xff]  ;;  %v726_v41 = vmul.f32 5.0, %v470_v30 }
  0x67   : > { %965 = vst [vmem:[%s1539_s17 + $0x1c8] sm:$0xff] %v709_v54  ;;  %v474_v42 = vand.u32 2147483647, %v218_v34  ;;  %v221_v43 = vld [vmem:[%s1526_s24 + $0x288] sm:$0xff]  ;;  %v727_v44 = vmul.f32 5.0, %v471_v33  ;;  %v222_v46 = vld [vmem:[%s1526_s24 + $0x290] sm:$0xff] }
  0x68   : > { %966 = vst [vmem:[%s1539_s17 + $0x1d0] sm:$0xff] %v710_v57  ;;  %v475_v45 = vand.u32 2147483647, %v219_v37  ;;  %v728_v47 = vmul.f32 5.0, %v472_v36  ;;  %v476_v48 = vand.u32 2147483647, %v220_v40 }
  0x69   : > { %967 = vst [vmem:[%s1539_s17 + $0x1d8] sm:$0xff] %v711_v60  ;;  %v223_v49 = vld [vmem:[%s1526_s24 + $0x298] sm:$0xff]  ;;  %v729_v50 = vmul.f32 5.0, %v473_v39  ;;  %v477_v51 = vand.u32 2147483647, %v221_v43  ;;  %v224_v52 = vld [vmem:[%s1526_s24 + $0x2a0] sm:$0xff] }
  0x6a   : > { %968 = vst [vmem:[%s1539_s17 + $0x1e0] sm:$0xff] %v712_v63  ;;  %v730_v53 = vmul.f32 5.0, %v474_v42  ;;  %v478_v54 = vand.u32 2147483647, %v222_v46  ;;  %v225_v55 = vld [vmem:[%s1526_s24 + $0x2a8] sm:$0xff]  ;;  %v731_v56 = vmul.f32 5.0, %v475_v45 }
  0x6b   : > { %969 = vst [vmem:[%s1539_s17 + $0x1e8] sm:$0xff] %v713_v2  ;;  %v479_v57 = vand.u32 2147483647, %v223_v49  ;;  %v226_v58 = vld [vmem:[%s1526_s24 + $0x2b0] sm:$0xff]  ;;  %v732_v59 = vmul.f32 5.0, %v476_v48  ;;  %v227_v61 = vld [vmem:[%s1526_s24 + $0x2b8] sm:$0xff] }
  0x6c   : > { %970 = vst [vmem:[%s1539_s17 + $0x1f0] sm:$0xff] %v714_v5  ;;  %v480_v60 = vand.u32 2147483647, %v224_v52  ;;  %v733_v62 = vmul.f32 5.0, %v477_v51  ;;  %v481_v63 = vand.u32 2147483647, %v225_v55 }
  0x6d   : > { %971 = vst [vmem:[%s1539_s17 + $0x1f8] sm:$0xff] %v715_v8  ;;  %v228_v0 = vld [vmem:[%s1526_s24 + $0x2c0] sm:$0xff]  ;;  %v734_v1 = vmul.f32 5.0, %v478_v54  ;;  %v482_v2 = vand.u32 2147483647, %v226_v58  ;;  %v229_v3 = vld [vmem:[%s1526_s24 + $0x2c8] sm:$0xff] }
  0x6e   : > { %972 = vst [vmem:[%s1539_s17 + $0x200] sm:$0xff] %v716_v11  ;;  %v735_v4 = vmul.f32 5.0, %v479_v57  ;;  %v483_v5 = vand.u32 2147483647, %v227_v61  ;;  %v230_v6 = vld [vmem:[%s1526_s24 + $0x2d0] sm:$0xff]  ;;  %v736_v7 = vmul.f32 5.0, %v480_v60 }
  0x6f   : > { %973 = vst [vmem:[%s1539_s17 + $0x208] sm:$0xff] %v717_v14  ;;  %v484_v8 = vand.u32 2147483647, %v228_v0  ;;  %v231_v9 = vld [vmem:[%s1526_s24 + $0x2d8] sm:$0xff]  ;;  %v737_v10 = vmul.f32 5.0, %v481_v63  ;;  %v232_v12 = vld [vmem:[%s1526_s24 + $0x2e0] sm:$0xff] }
  0x70   : > { %974 = vst [vmem:[%s1539_s17 + $0x210] sm:$0xff] %v718_v17  ;;  %v485_v11 = vand.u32 2147483647, %v229_v3  ;;  %v738_v13 = vmul.f32 5.0, %v482_v2  ;;  %v486_v14 = vand.u32 2147483647, %v230_v6 }
  0x71   : > { %975 = vst [vmem:[%s1539_s17 + $0x218] sm:$0xff] %v719_v20  ;;  %v233_v15 = vld [vmem:[%s1526_s24 + $0x2e8] sm:$0xff]  ;;  %v739_v16 = vmul.f32 5.0, %v483_v5  ;;  %v487_v17 = vand.u32 2147483647, %v231_v9  ;;  %v234_v18 = vld [vmem:[%s1526_s24 + $0x2f0] sm:$0xff] }
  0x72   : > { %976 = vst [vmem:[%s1539_s17 + $0x220] sm:$0xff] %v720_v23  ;;  %v740_v19 = vmul.f32 5.0, %v484_v8  ;;  %v488_v20 = vand.u32 2147483647, %v232_v12  ;;  %v235_v21 = vld [vmem:[%s1526_s24 + $0x2f8] sm:$0xff]  ;;  %v741_v22 = vmul.f32 5.0, %v485_v11 }
  0x73   : > { %977 = vst [vmem:[%s1539_s17 + $0x228] sm:$0xff] %v721_v26  ;;  %v489_v23 = vand.u32 2147483647, %v233_v15  ;;  %v236_v24 = vld [vmem:[%s1526_s24 + $0x300] sm:$0xff]  ;;  %v742_v25 = vmul.f32 5.0, %v486_v14  ;;  %v237_v27 = vld [vmem:[%s1526_s24 + $0x308] sm:$0xff] }
  0x74   : > { %978 = vst [vmem:[%s1539_s17 + $0x230] sm:$0xff] %v722_v29  ;;  %v490_v26 = vand.u32 2147483647, %v234_v18  ;;  %v743_v28 = vmul.f32 5.0, %v487_v17  ;;  %v491_v29 = vand.u32 2147483647, %v235_v21 }
  0x75   : > { %979 = vst [vmem:[%s1539_s17 + $0x238] sm:$0xff] %v723_v32  ;;  %v238_v30 = vld [vmem:[%s1526_s24 + $0x310] sm:$0xff]  ;;  %v744_v31 = vmul.f32 5.0, %v488_v20  ;;  %v492_v32 = vand.u32 2147483647, %v236_v24  ;;  %v239_v33 = vld [vmem:[%s1526_s24 + $0x318] sm:$0xff] }
  0x76   : > { %980 = vst [vmem:[%s1539_s17 + $0x240] sm:$0xff] %v724_v35  ;;  %v745_v34 = vmul.f32 5.0, %v489_v23  ;;  %v493_v35 = vand.u32 2147483647, %v237_v27  ;;  %v240_v36 = vld [vmem:[%s1526_s24 + $0x320] sm:$0xff]  ;;  %v746_v37 = vmul.f32 5.0, %v490_v26 }
  0x77   : > { %981 = vst [vmem:[%s1539_s17 + $0x248] sm:$0xff] %v725_v38  ;;  %v494_v38 = vand.u32 2147483647, %v238_v30  ;;  %v241_v39 = vld [vmem:[%s1526_s24 + $0x328] sm:$0xff]  ;;  %v747_v40 = vmul.f32 5.0, %v491_v29  ;;  %v242_v42 = vld [vmem:[%s1526_s24 + $0x330] sm:$0xff] }
  0x78   : > { %982 = vst [vmem:[%s1539_s17 + $0x250] sm:$0xff] %v726_v41  ;;  %v495_v41 = vand.u32 2147483647, %v239_v33  ;;  %v748_v43 = vmul.f32 5.0, %v492_v32  ;;  %v243_v45 = vld [vmem:[%s1526_s24 + $0x338] sm:$0xff]  ;;  %v749_v46 = vmul.f32 5.0, %v493_v35 }
  0x79   : > { %983 = vst [vmem:[%s1539_s17 + $0x258] sm:$0xff] %v727_v44  ;;  %v496_v44 = vand.u32 2147483647, %v240_v36  ;;  %v244_v48 = vld [vmem:[%s1526_s24 + $0x340] sm:$0xff]  ;;  %v750_v49 = vmul.f32 5.0, %v494_v38  ;;  %v245_v51 = vld [vmem:[%s1526_s24 + $0x348] sm:$0xff] }
  0x7a   : > { %984 = vst [vmem:[%s1539_s17 + $0x260] sm:$0xff] %v728_v47  ;;  %v497_v47 = vand.u32 2147483647, %v241_v39  ;;  %v751_v52 = vmul.f32 5.0, %v495_v41  ;;  %v246_v54 = vld [vmem:[%s1526_s24 + $0x350] sm:$0xff]  ;;  %v247_v57 = vld [vmem:[%s1526_s24 + $0x358] sm:$0xff] }
  0x7b   : > { %985 = vst [vmem:[%s1539_s17 + $0x268] sm:$0xff] %v729_v50  ;;  %v498_v50 = vand.u32 2147483647, %v242_v42  ;;  %v752_v55 = vmul.f32 5.0, %v496_v44  ;;  %v248_v60 = vld [vmem:[%s1526_s24 + $0x360] sm:$0xff]  ;;  %v249_v63 = vld [vmem:[%s1526_s24 + $0x368] sm:$0xff] }
  0x7c   : > { %986 = vst [vmem:[%s1539_s17 + $0x270] sm:$0xff] %v730_v53  ;;  %v499_v53 = vand.u32 2147483647, %v243_v45  ;;  %v753_v58 = vmul.f32 5.0, %v497_v47  ;;  %v250_v2 = vld [vmem:[%s1526_s24 + $0x370] sm:$0xff]  ;;  %v251_v5 = vld [vmem:[%s1526_s24 + $0x378] sm:$0xff] }
  0x7d   : > { %987 = vst [vmem:[%s1539_s17 + $0x278] sm:$0xff] %v731_v56  ;;  %v500_v56 = vand.u32 2147483647, %v244_v48  ;;  %v754_v61 = vmul.f32 5.0, %v498_v50  ;;  %v252_v8 = vld [vmem:[%s1526_s24 + $0x380] sm:$0xff]  ;;  %v253_v11 = vld [vmem:[%s1526_s24 + $0x388] sm:$0xff] }
  0x7e   : > { %988 = vst [vmem:[%s1539_s17 + $0x280] sm:$0xff] %v732_v59  ;;  %v501_v59 = vand.u32 2147483647, %v245_v51  ;;  %v755_v0 = vmul.f32 5.0, %v499_v53  ;;  %v254_v14 = vld [vmem:[%s1526_s24 + $0x390] sm:$0xff]  ;;  %v255_v17 = vld [vmem:[%s1526_s24 + $0x398] sm:$0xff] }
  0x7f   : > { %989 = vst [vmem:[%s1539_s17 + $0x288] sm:$0xff] %v733_v62  ;;  %v502_v62 = vand.u32 2147483647, %v246_v54  ;;  %v756_v3 = vmul.f32 5.0, %v500_v56  ;;  %v256_v20 = vld [vmem:[%s1526_s24 + $0x3a0] sm:$0xff]  ;;  %v257_v23 = vld [vmem:[%s1526_s24 + $0x3a8] sm:$0xff] }
  0x80   : > { %990 = vst [vmem:[%s1539_s17 + $0x290] sm:$0xff] %v734_v1  ;;  %v503_v1 = vand.u32 2147483647, %v247_v57  ;;  %v757_v6 = vmul.f32 5.0, %v501_v59  ;;  %v258_v26 = vld [vmem:[%s1526_s24 + $0x3b0] sm:$0xff]  ;;  %v259_v29 = vld [vmem:[%s1526_s24 + $0x3b8] sm:$0xff] }
  0x81   : > { %991 = vst [vmem:[%s1539_s17 + $0x298] sm:$0xff] %v735_v4  ;;  %v504_v4 = vand.u32 2147483647, %v248_v60  ;;  %v758_v9 = vmul.f32 5.0, %v502_v62  ;;  %v260_v32 = vld [vmem:[%s1526_s24 + $0x3c0] sm:$0xff]  ;;  %v261_v35 = vld [vmem:[%s1526_s24 + $0x3c8] sm:$0xff] }
  0x82   : > { %992 = vst [vmem:[%s1539_s17 + $0x2a0] sm:$0xff] %v736_v7  ;;  %v505_v7 = vand.u32 2147483647, %v249_v63  ;;  %v759_v12 = vmul.f32 5.0, %v503_v1  ;;  %v262_v38 = vld [vmem:[%s1526_s24 + $0x3d0] sm:$0xff]  ;;  %v263_v41 = vld [vmem:[%s1526_s24 + $0x3d8] sm:$0xff] }
  0x83   : > { %993 = vst [vmem:[%s1539_s17 + $0x2a8] sm:$0xff] %v737_v10  ;;  %v506_v10 = vand.u32 2147483647, %v250_v2  ;;  %v760_v15 = vmul.f32 5.0, %v504_v4  ;;  %v264_v44 = vld [vmem:[%s1526_s24 + $0x3e0] sm:$0xff]  ;;  %v265_v47 = vld [vmem:[%s1526_s24 + $0x3e8] sm:$0xff] }
  0x84   : > { %994 = vst [vmem:[%s1539_s17 + $0x2b0] sm:$0xff] %v738_v13  ;;  %v507_v13 = vand.u32 2147483647, %v251_v5  ;;  %v761_v18 = vmul.f32 5.0, %v505_v7  ;;  %v266_v50 = vld [vmem:[%s1526_s24 + $0x3f0] sm:$0xff]  ;;  %v267_v53 = vld [vmem:[%s1526_s24 + $0x3f8] sm:$0xff] }
  0x85   : > { %995 = vst [vmem:[%s1539_s17 + $0x2b8] sm:$0xff] %v739_v16  ;;  %v508_v16 = vand.u32 2147483647, %v252_v8  ;;  %v762_v21 = vmul.f32 5.0, %v506_v10  ;;  %v268_v56 = vld [vmem:[%s1526_s24 + $0x400] sm:$0xff]  ;;  %v269_v59 = vld [vmem:[%s1526_s24 + $0x408] sm:$0xff] }
  0x86   : > { %996 = vst [vmem:[%s1539_s17 + $0x2c0] sm:$0xff] %v740_v19  ;;  %v509_v19 = vand.u32 2147483647, %v253_v11  ;;  %v763_v24 = vmul.f32 5.0, %v507_v13  ;;  %v270_v62 = vld [vmem:[%s1526_s24 + $0x410] sm:$0xff]  ;;  %v271_v1 = vld [vmem:[%s1526_s24 + $0x418] sm:$0xff] }
  0x87   : > { %997 = vst [vmem:[%s1539_s17 + $0x2c8] sm:$0xff] %v741_v22  ;;  %v510_v22 = vand.u32 2147483647, %v254_v14  ;;  %v764_v27 = vmul.f32 5.0, %v508_v16  ;;  %v272_v4 = vld [vmem:[%s1526_s24 + $0x420] sm:$0xff]  ;;  %v273_v7 = vld [vmem:[%s1526_s24 + $0x428] sm:$0xff] }
  0x88   : > { %998 = vst [vmem:[%s1539_s17 + $0x2d0] sm:$0xff] %v742_v25  ;;  %v511_v25 = vand.u32 2147483647, %v255_v17  ;;  %v765_v30 = vmul.f32 5.0, %v509_v19  ;;  %v274_v10 = vld [vmem:[%s1526_s24 + $0x430] sm:$0xff]  ;;  %v275_v13 = vld [vmem:[%s1526_s24 + $0x438] sm:$0xff] }
  0x89   : > { %999 = vst [vmem:[%s1539_s17 + $0x2d8] sm:$0xff] %v743_v28  ;;  %v512_v28 = vand.u32 2147483647, %v256_v20  ;;  %v766_v33 = vmul.f32 5.0, %v510_v22  ;;  %v276_v16 = vld [vmem:[%s1526_s24 + $0x440] sm:$0xff]  ;;  %v277_v19 = vld [vmem:[%s1526_s24 + $0x448] sm:$0xff] }
  0x8a   : > { %1000 = vst [vmem:[%s1539_s17 + $0x2e0] sm:$0xff] %v744_v31  ;;  %v513_v31 = vand.u32 2147483647, %v257_v23  ;;  %v767_v36 = vmul.f32 5.0, %v511_v25  ;;  %v278_v22 = vld [vmem:[%s1526_s24 + $0x450] sm:$0xff]  ;;  %v279_v25 = vld [vmem:[%s1526_s24 + $0x458] sm:$0xff] }
  0x8b   : > { %1001 = vst [vmem:[%s1539_s17 + $0x2e8] sm:$0xff] %v745_v34  ;;  %v514_v34 = vand.u32 2147483647, %v258_v26  ;;  %v768_v39 = vmul.f32 5.0, %v512_v28  ;;  %v280_v28 = vld [vmem:[%s1526_s24 + $0x460] sm:$0xff]  ;;  %s1178_s10 = sshll.u32 %s1539_s17, 4  ;;  %s1179_s10 = int_to_ptr.vmem [resolvable:$true] %s1178_s10 }
  0x8c   : > { %1002 = vst [vmem:[%s1539_s17 + $0x2f0] sm:$0xff] %v746_v37  ;;  %v515_v37 = vand.u32 2147483647, %v259_v29  ;;  %v769_v42 = vmul.f32 5.0, %v513_v31  ;;  %v281_v31 = vld [vmem:[%s1526_s24 + $0x468] sm:$0xff]  ;;  %s1180_s29 = sshll.u32 %s1177_s28, 4  ;;  %s1181_s29 = int_to_ptr.hbm [resolvable:$true] %s1180_s29 }
  0x8d   : > { %1003 = vst [vmem:[%s1539_s17 + $0x2f8] sm:$0xff] %v747_v40  ;;  %v516_v40 = vand.u32 2147483647, %v260_v32  ;;  %v770_v45 = vmul.f32 5.0, %v514_v34  ;;  %v282_v34 = vld [vmem:[%s1526_s24 + $0x470] sm:$0xff]  ;;  %s1165_s30 = scalar_lea.sflag [#allocation4], %s1522_s21 }
  0x8e   : > { %1004 = vst [vmem:[%s1539_s17 + $0x300] sm:$0xff] %v748_v43  ;;  %v517_v43 = vand.u32 2147483647, %v261_v35  ;;  %v771_v48 = vmul.f32 5.0, %v515_v37  ;;  %v283_v37 = vld [vmem:[%s1526_s24 + $0x478] sm:$0xff]  ;;  %s1368_s2 = sshra.s32 %s1181_s29, 4  ;;  %s1369_s2 = int_to_ptr.hbm [resolvable:$true] %s1368_s2 }
  0x8f   : > { %1005 = vst [vmem:[%s1539_s17 + $0x308] sm:$0xff] %v749_v46  ;;  %v518_v46 = vand.u32 2147483647, %v262_v38  ;;  %v772_v51 = vmul.f32 5.0, %v516_v40  ;;  %v284_v40 = vld [vmem:[%s1526_s24 + $0x480] sm:$0xff]  ;;  %s1370_s3 = scalar_lea.hbm %s1369_s2, 2048  ;;  %p1375_p0 = scmp.lt.s32.totalorder %s1369_s2, %s2081_s1 }
  0x90   : > { %1006 = vst [vmem:[%s1539_s17 + $0x310] sm:$0xff] %v750_v49  ;;  %v519_v49 = vand.u32 2147483647, %v263_v41  ;;  %v773_v54 = vmul.f32 5.0, %v517_v43  ;;  %v285_v43 = vld [vmem:[%s1526_s24 + $0x488] sm:$0xff]  ;;  %p1371_p6 = scmp.ne.s32.totalorder %s1369_s2, %s1370_s3  ;;  %s1374_s11 = scalar_lea.hbm %s2081_s1, 4096 }
  0x91   : > { %1007 = vst [vmem:[%s1539_s17 + $0x318] sm:$0xff] %v751_v52  ;;  %v520_v52 = vand.u32 2147483647, %v264_v44  ;;  %v774_v57 = vmul.f32 5.0, %v518_v46  ;;  %v286_v46 = vld [vmem:[%s1526_s24 + $0x490] sm:$0xff]  ;;  %p1376_p1 = scmp.lt.s32.totalorder %s1374_s11, %s1370_s3 }
  0x92   : > { %1008 = vst [vmem:[%s1539_s17 + $0x320] sm:$0xff] %v752_v55  ;;  %v521_v55 = vand.u32 2147483647, %v265_v47  ;;  %v775_v60 = vmul.f32 5.0, %v519_v49  ;;  %v287_v49 = vld [vmem:[%s1526_s24 + $0x498] sm:$0xff]  ;;  %p1372_p9 = pnand %p1371_p6, %p1486_p11 }
  0x93   : > { %1009 = vst [vmem:[%s1539_s17 + $0x328] sm:$0xff] %v753_v58  ;;  %v522_v58 = vand.u32 2147483647, %v266_v50  ;;  %v776_v63 = vmul.f32 5.0, %v520_v52  ;;  %v288_v52 = vld [vmem:[%s1526_s24 + $0x4a0] sm:$0xff]  ;;  %p1377_p3 = por %p1376_p1, %p1375_p0 }
  0x94   : > { %1010 = vst [vmem:[%s1539_s17 + $0x330] sm:$0xff] %v754_v61  ;;  %v523_v61 = vand.u32 2147483647, %v267_v53  ;;  %v777_v2 = vmul.f32 5.0, %v521_v55  ;;  %v289_v55 = vld [vmem:[%s1526_s24 + $0x4a8] sm:$0xff]  ;;  %p1373_p13 = pneg %p1372_p9 }
  0x95   : > { %1011 = vst [vmem:[%s1539_s17 + $0x338] sm:$0xff] %v755_v0  ;;  %v524_v0 = vand.u32 2147483647, %v268_v56  ;;  %v778_v5 = vmul.f32 5.0, %v522_v58  ;;  %v290_v58 = vld [vmem:[%s1526_s24 + $0x4b0] sm:$0xff] }
  0x96   : > { %1012 = vst [vmem:[%s1539_s17 + $0x340] sm:$0xff] %v756_v3  ;;  %v525_v3 = vand.u32 2147483647, %v269_v59  ;;  %v779_v8 = vmul.f32 5.0, %v523_v61  ;;  %v291_v61 = vld [vmem:[%s1526_s24 + $0x4b8] sm:$0xff]  ;;  %p1378_p4 = pnand %p1377_p3, %p1373_p13 }
  0x97   : > { %1013 = vst [vmem:[%s1539_s17 + $0x348] sm:$0xff] %v757_v6  ;;  %v526_v6 = vand.u32 2147483647, %v270_v62  ;;  %v780_v11 = vmul.f32 5.0, %v524_v0  ;;  %v292_v0 = vld [vmem:[%s1526_s24 + $0x4c0] sm:$0xff] }
  0x98   : > { %1014 = vst [vmem:[%s1539_s17 + $0x350] sm:$0xff] %v758_v9  ;;  %v527_v9 = vand.u32 2147483647, %v271_v1  ;;  %v781_v14 = vmul.f32 5.0, %v525_v3  ;;  %v293_v3 = vld [vmem:[%s1526_s24 + $0x4c8] sm:$0xff] }
  0x99   : > { %1015 = vst [vmem:[%s1539_s17 + $0x358] sm:$0xff] %v759_v12  ;;  %v528_v12 = vand.u32 2147483647, %v272_v4  ;;  %v782_v17 = vmul.f32 5.0, %v526_v6  ;;  %v294_v6 = vld [vmem:[%s1526_s24 + $0x4d0] sm:$0xff] }
  0x9a   : > { %1016 = vst [vmem:[%s1539_s17 + $0x360] sm:$0xff] %v760_v15  ;;  %v529_v15 = vand.u32 2147483647, %v273_v7  ;;  %v783_v20 = vmul.f32 5.0, %v527_v9  ;;  %v295_v9 = vld [vmem:[%s1526_s24 + $0x4d8] sm:$0xff] }
  0x9b   : > { %1017 = vst [vmem:[%s1539_s17 + $0x368] sm:$0xff] %v761_v18  ;;  %v530_v18 = vand.u32 2147483647, %v274_v10  ;;  %v784_v23 = vmul.f32 5.0, %v528_v12  ;;  %v296_v12 = vld [vmem:[%s1526_s24 + $0x4e0] sm:$0xff] }
  0x9c   : > { %1018 = vst [vmem:[%s1539_s17 + $0x370] sm:$0xff] %v762_v21  ;;  %v531_v21 = vand.u32 2147483647, %v275_v13  ;;  %v785_v26 = vmul.f32 5.0, %v529_v15  ;;  %v297_v15 = vld [vmem:[%s1526_s24 + $0x4e8] sm:$0xff] }
  0x9d   : > { %1019 = vst [vmem:[%s1539_s17 + $0x378] sm:$0xff] %v763_v24  ;;  %v532_v24 = vand.u32 2147483647, %v276_v16  ;;  %v786_v29 = vmul.f32 5.0, %v530_v18  ;;  %v298_v18 = vld [vmem:[%s1526_s24 + $0x4f0] sm:$0xff] }
  0x9e   : > { %1020 = vst [vmem:[%s1539_s17 + $0x380] sm:$0xff] %v764_v27  ;;  %v533_v27 = vand.u32 2147483647, %v277_v19  ;;  %v787_v32 = vmul.f32 5.0, %v531_v21  ;;  %v299_v21 = vld [vmem:[%s1526_s24 + $0x4f8] sm:$0xff] }
  0x9f   : > { %1021 = vst [vmem:[%s1539_s17 + $0x388] sm:$0xff] %v765_v30  ;;  %v534_v30 = vand.u32 2147483647, %v278_v22  ;;  %v788_v35 = vmul.f32 5.0, %v532_v24  ;;  %v300_v24 = vld [vmem:[%s1526_s24 + $0x500] sm:$0xff] }
  0xa0   : > { %1022 = vst [vmem:[%s1539_s17 + $0x390] sm:$0xff] %v766_v33  ;;  %v535_v33 = vand.u32 2147483647, %v279_v25  ;;  %v789_v38 = vmul.f32 5.0, %v533_v27  ;;  %v301_v27 = vld [vmem:[%s1526_s24 + $0x508] sm:$0xff] }
  0xa1   : > { %1023 = vst [vmem:[%s1539_s17 + $0x398] sm:$0xff] %v767_v36  ;;  %v536_v36 = vand.u32 2147483647, %v280_v28  ;;  %v790_v41 = vmul.f32 5.0, %v534_v30  ;;  %v302_v30 = vld [vmem:[%s1526_s24 + $0x510] sm:$0xff] }
  0xa2   : > { %1024 = vst [vmem:[%s1539_s17 + $0x3a0] sm:$0xff] %v768_v39  ;;  %v537_v39 = vand.u32 2147483647, %v281_v31  ;;  %v791_v44 = vmul.f32 5.0, %v535_v33  ;;  %v303_v33 = vld [vmem:[%s1526_s24 + $0x518] sm:$0xff] }
  0xa3   : > { %1025 = vst [vmem:[%s1539_s17 + $0x3a8] sm:$0xff] %v769_v42  ;;  %v538_v42 = vand.u32 2147483647, %v282_v34  ;;  %v792_v47 = vmul.f32 5.0, %v536_v36  ;;  %v304_v36 = vld [vmem:[%s1526_s24 + $0x520] sm:$0xff] }
  0xa4   : > { %1026 = vst [vmem:[%s1539_s17 + $0x3b0] sm:$0xff] %v770_v45  ;;  %v539_v45 = vand.u32 2147483647, %v283_v37  ;;  %v793_v50 = vmul.f32 5.0, %v537_v39  ;;  %v305_v39 = vld [vmem:[%s1526_s24 + $0x528] sm:$0xff] }
  0xa5   : > { %1027 = vst [vmem:[%s1539_s17 + $0x3b8] sm:$0xff] %v771_v48  ;;  %v540_v48 = vand.u32 2147483647, %v284_v40  ;;  %v794_v53 = vmul.f32 5.0, %v538_v42  ;;  %v306_v42 = vld [vmem:[%s1526_s24 + $0x530] sm:$0xff] }
  0xa6   : > { %1028 = vst [vmem:[%s1539_s17 + $0x3c0] sm:$0xff] %v772_v51  ;;  %v541_v51 = vand.u32 2147483647, %v285_v43  ;;  %v795_v56 = vmul.f32 5.0, %v539_v45  ;;  %v307_v45 = vld [vmem:[%s1526_s24 + $0x538] sm:$0xff] }
  0xa7   : > { %1029 = vst [vmem:[%s1539_s17 + $0x3c8] sm:$0xff] %v773_v54  ;;  %v542_v54 = vand.u32 2147483647, %v286_v46  ;;  %v796_v59 = vmul.f32 5.0, %v540_v48  ;;  %v308_v48 = vld [vmem:[%s1526_s24 + $0x540] sm:$0xff] }
  0xa8   : > { %1030 = vst [vmem:[%s1539_s17 + $0x3d0] sm:$0xff] %v774_v57  ;;  %v543_v57 = vand.u32 2147483647, %v287_v49  ;;  %v797_v62 = vmul.f32 5.0, %v541_v51  ;;  %v309_v51 = vld [vmem:[%s1526_s24 + $0x548] sm:$0xff] }
  0xa9   : > { %1031 = vst [vmem:[%s1539_s17 + $0x3d8] sm:$0xff] %v775_v60  ;;  %v544_v60 = vand.u32 2147483647, %v288_v52  ;;  %v798_v1 = vmul.f32 5.0, %v542_v54  ;;  %v310_v54 = vld [vmem:[%s1526_s24 + $0x550] sm:$0xff] }
  0xaa   : > { %1032 = vst [vmem:[%s1539_s17 + $0x3e0] sm:$0xff] %v776_v63  ;;  %v545_v63 = vand.u32 2147483647, %v289_v55  ;;  %v799_v4 = vmul.f32 5.0, %v543_v57  ;;  %v311_v57 = vld [vmem:[%s1526_s24 + $0x558] sm:$0xff] }
  0xab   : > { %1033 = vst [vmem:[%s1539_s17 + $0x3e8] sm:$0xff] %v777_v2  ;;  %v546_v2 = vand.u32 2147483647, %v290_v58  ;;  %v800_v7 = vmul.f32 5.0, %v544_v60  ;;  %v312_v60 = vld [vmem:[%s1526_s24 + $0x560] sm:$0xff] }
  0xac   : > { %1034 = vst [vmem:[%s1539_s17 + $0x3f0] sm:$0xff] %v778_v5  ;;  %v547_v5 = vand.u32 2147483647, %v291_v61  ;;  %v801_v10 = vmul.f32 5.0, %v545_v63  ;;  %v313_v63 = vld [vmem:[%s1526_s24 + $0x568] sm:$0xff] }
  0xad   : > { %1035 = vst [vmem:[%s1539_s17 + $0x3f8] sm:$0xff] %v779_v8  ;;  %v548_v8 = vand.u32 2147483647, %v292_v0  ;;  %v802_v13 = vmul.f32 5.0, %v546_v2  ;;  %v314_v2 = vld [vmem:[%s1526_s24 + $0x570] sm:$0xff] }
  0xae   : > { %1036 = vst [vmem:[%s1539_s17 + $0x400] sm:$0xff] %v780_v11  ;;  %v549_v11 = vand.u32 2147483647, %v293_v3  ;;  %v803_v16 = vmul.f32 5.0, %v547_v5  ;;  %v315_v5 = vld [vmem:[%s1526_s24 + $0x578] sm:$0xff] }
  0xaf   : > { %1037 = vst [vmem:[%s1539_s17 + $0x408] sm:$0xff] %v781_v14  ;;  %v550_v14 = vand.u32 2147483647, %v294_v6  ;;  %v804_v19 = vmul.f32 5.0, %v548_v8  ;;  %v316_v8 = vld [vmem:[%s1526_s24 + $0x580] sm:$0xff] }
  0xb0   : > { %1038 = vst [vmem:[%s1539_s17 + $0x410] sm:$0xff] %v782_v17  ;;  %v551_v17 = vand.u32 2147483647, %v295_v9  ;;  %v805_v22 = vmul.f32 5.0, %v549_v11  ;;  %v317_v11 = vld [vmem:[%s1526_s24 + $0x588] sm:$0xff] }
  0xb1   : > { %1039 = vst [vmem:[%s1539_s17 + $0x418] sm:$0xff] %v783_v20  ;;  %v552_v20 = vand.u32 2147483647, %v296_v12  ;;  %v806_v25 = vmul.f32 5.0, %v550_v14  ;;  %v318_v14 = vld [vmem:[%s1526_s24 + $0x590] sm:$0xff] }
  0xb2   : > { %1040 = vst [vmem:[%s1539_s17 + $0x420] sm:$0xff] %v784_v23  ;;  %v553_v23 = vand.u32 2147483647, %v297_v15  ;;  %v807_v28 = vmul.f32 5.0, %v551_v17  ;;  %v319_v17 = vld [vmem:[%s1526_s24 + $0x598] sm:$0xff] }
  0xb3   : > { %1041 = vst [vmem:[%s1539_s17 + $0x428] sm:$0xff] %v785_v26  ;;  %v554_v26 = vand.u32 2147483647, %v298_v18  ;;  %v808_v31 = vmul.f32 5.0, %v552_v20  ;;  %v320_v20 = vld [vmem:[%s1526_s24 + $0x5a0] sm:$0xff] }
  0xb4   : > { %1042 = vst [vmem:[%s1539_s17 + $0x430] sm:$0xff] %v786_v29  ;;  %v555_v29 = vand.u32 2147483647, %v299_v21  ;;  %v809_v34 = vmul.f32 5.0, %v553_v23  ;;  %v321_v23 = vld [vmem:[%s1526_s24 + $0x5a8] sm:$0xff] }
  0xb5   : > { %1043 = vst [vmem:[%s1539_s17 + $0x438] sm:$0xff] %v787_v32  ;;  %v556_v32 = vand.u32 2147483647, %v300_v24  ;;  %v810_v37 = vmul.f32 5.0, %v554_v26  ;;  %v322_v26 = vld [vmem:[%s1526_s24 + $0x5b0] sm:$0xff] }
  0xb6   : > { %1044 = vst [vmem:[%s1539_s17 + $0x440] sm:$0xff] %v788_v35  ;;  %v557_v35 = vand.u32 2147483647, %v301_v27  ;;  %v811_v40 = vmul.f32 5.0, %v555_v29  ;;  %v323_v29 = vld [vmem:[%s1526_s24 + $0x5b8] sm:$0xff] }
  0xb7   : > { %1045 = vst [vmem:[%s1539_s17 + $0x448] sm:$0xff] %v789_v38  ;;  %v558_v38 = vand.u32 2147483647, %v302_v30  ;;  %v812_v43 = vmul.f32 5.0, %v556_v32  ;;  %v324_v32 = vld [vmem:[%s1526_s24 + $0x5c0] sm:$0xff] }
  0xb8   : > { %1046 = vst [vmem:[%s1539_s17 + $0x450] sm:$0xff] %v790_v41  ;;  %v559_v41 = vand.u32 2147483647, %v303_v33  ;;  %v813_v46 = vmul.f32 5.0, %v557_v35  ;;  %v325_v35 = vld [vmem:[%s1526_s24 + $0x5c8] sm:$0xff] }
  0xb9   : > { %1047 = vst [vmem:[%s1539_s17 + $0x458] sm:$0xff] %v791_v44  ;;  %v560_v44 = vand.u32 2147483647, %v304_v36  ;;  %v814_v49 = vmul.f32 5.0, %v558_v38  ;;  %v326_v38 = vld [vmem:[%s1526_s24 + $0x5d0] sm:$0xff] }
  0xba   : > { %1048 = vst [vmem:[%s1539_s17 + $0x460] sm:$0xff] %v792_v47  ;;  %v561_v47 = vand.u32 2147483647, %v305_v39  ;;  %v815_v52 = vmul.f32 5.0, %v559_v41  ;;  %v327_v41 = vld [vmem:[%s1526_s24 + $0x5d8] sm:$0xff] }
  0xbb   : > { %1049 = vst [vmem:[%s1539_s17 + $0x468] sm:$0xff] %v793_v50  ;;  %v562_v50 = vand.u32 2147483647, %v306_v42  ;;  %v816_v55 = vmul.f32 5.0, %v560_v44  ;;  %v328_v44 = vld [vmem:[%s1526_s24 + $0x5e0] sm:$0xff] }
  0xbc   : > { %1050 = vst [vmem:[%s1539_s17 + $0x470] sm:$0xff] %v794_v53  ;;  %v563_v53 = vand.u32 2147483647, %v307_v45  ;;  %v817_v58 = vmul.f32 5.0, %v561_v47  ;;  %v329_v47 = vld [vmem:[%s1526_s24 + $0x5e8] sm:$0xff] }
  0xbd   : > { %1051 = vst [vmem:[%s1539_s17 + $0x478] sm:$0xff] %v795_v56  ;;  %v564_v56 = vand.u32 2147483647, %v308_v48  ;;  %v818_v61 = vmul.f32 5.0, %v562_v50  ;;  %v330_v50 = vld [vmem:[%s1526_s24 + $0x5f0] sm:$0xff] }
  0xbe   : > { %1052 = vst [vmem:[%s1539_s17 + $0x480] sm:$0xff] %v796_v59  ;;  %v565_v59 = vand.u32 2147483647, %v309_v51  ;;  %v819_v0 = vmul.f32 5.0, %v563_v53  ;;  %v331_v53 = vld [vmem:[%s1526_s24 + $0x5f8] sm:$0xff] }
  0xbf   : > { %1053 = vst [vmem:[%s1539_s17 + $0x488] sm:$0xff] %v797_v62  ;;  %v566_v62 = vand.u32 2147483647, %v310_v54  ;;  %v820_v3 = vmul.f32 5.0, %v564_v56  ;;  %v332_v56 = vld [vmem:[%s1526_s24 + $0x600] sm:$0xff] }
  0xc0   : > { %1054 = vst [vmem:[%s1539_s17 + $0x490] sm:$0xff] %v798_v1  ;;  %v567_v1 = vand.u32 2147483647, %v311_v57  ;;  %v821_v6 = vmul.f32 5.0, %v565_v59  ;;  %v333_v59 = vld [vmem:[%s1526_s24 + $0x608] sm:$0xff] }
  0xc1   : > { %1055 = vst [vmem:[%s1539_s17 + $0x498] sm:$0xff] %v799_v4  ;;  %v568_v4 = vand.u32 2147483647, %v312_v60  ;;  %v822_v9 = vmul.f32 5.0, %v566_v62  ;;  %v334_v62 = vld [vmem:[%s1526_s24 + $0x610] sm:$0xff] }
  0xc2   : > { %1056 = vst [vmem:[%s1539_s17 + $0x4a0] sm:$0xff] %v800_v7  ;;  %v569_v7 = vand.u32 2147483647, %v313_v63  ;;  %v823_v12 = vmul.f32 5.0, %v567_v1  ;;  %v335_v1 = vld [vmem:[%s1526_s24 + $0x618] sm:$0xff] }
  0xc3   : > { %1057 = vst [vmem:[%s1539_s17 + $0x4a8] sm:$0xff] %v801_v10  ;;  %v570_v10 = vand.u32 2147483647, %v314_v2  ;;  %v824_v15 = vmul.f32 5.0, %v568_v4  ;;  %v336_v4 = vld [vmem:[%s1526_s24 + $0x620] sm:$0xff] }
  0xc4   : > { %1058 = vst [vmem:[%s1539_s17 + $0x4b0] sm:$0xff] %v802_v13  ;;  %v571_v13 = vand.u32 2147483647, %v315_v5  ;;  %v825_v18 = vmul.f32 5.0, %v569_v7  ;;  %v337_v7 = vld [vmem:[%s1526_s24 + $0x628] sm:$0xff] }
  0xc5   : > { %1059 = vst [vmem:[%s1539_s17 + $0x4b8] sm:$0xff] %v803_v16  ;;  %v572_v16 = vand.u32 2147483647, %v316_v8  ;;  %v826_v21 = vmul.f32 5.0, %v570_v10  ;;  %v338_v10 = vld [vmem:[%s1526_s24 + $0x630] sm:$0xff] }
  0xc6   : > { %1060 = vst [vmem:[%s1539_s17 + $0x4c0] sm:$0xff] %v804_v19  ;;  %v573_v19 = vand.u32 2147483647, %v317_v11  ;;  %v827_v24 = vmul.f32 5.0, %v571_v13  ;;  %v339_v13 = vld [vmem:[%s1526_s24 + $0x638] sm:$0xff] }
  0xc7   : > { %1061 = vst [vmem:[%s1539_s17 + $0x4c8] sm:$0xff] %v805_v22  ;;  %v574_v22 = vand.u32 2147483647, %v318_v14  ;;  %v828_v27 = vmul.f32 5.0, %v572_v16  ;;  %v340_v16 = vld [vmem:[%s1526_s24 + $0x640] sm:$0xff] }
  0xc8   : > { %1062 = vst [vmem:[%s1539_s17 + $0x4d0] sm:$0xff] %v806_v25  ;;  %v575_v25 = vand.u32 2147483647, %v319_v17  ;;  %v829_v30 = vmul.f32 5.0, %v573_v19  ;;  %v341_v19 = vld [vmem:[%s1526_s24 + $0x648] sm:$0xff] }
  0xc9   : > { %1063 = vst [vmem:[%s1539_s17 + $0x4d8] sm:$0xff] %v807_v28  ;;  %v576_v28 = vand.u32 2147483647, %v320_v20  ;;  %v830_v33 = vmul.f32 5.0, %v574_v22  ;;  %v342_v22 = vld [vmem:[%s1526_s24 + $0x650] sm:$0xff] }
  0xca   : > { %1064 = vst [vmem:[%s1539_s17 + $0x4e0] sm:$0xff] %v808_v31  ;;  %v577_v31 = vand.u32 2147483647, %v321_v23  ;;  %v831_v36 = vmul.f32 5.0, %v575_v25  ;;  %v343_v25 = vld [vmem:[%s1526_s24 + $0x658] sm:$0xff] }
  0xcb   : > { %1065 = vst [vmem:[%s1539_s17 + $0x4e8] sm:$0xff] %v809_v34  ;;  %v578_v34 = vand.u32 2147483647, %v322_v26  ;;  %v832_v39 = vmul.f32 5.0, %v576_v28  ;;  %v344_v28 = vld [vmem:[%s1526_s24 + $0x660] sm:$0xff] }
  0xcc   : > { %1066 = vst [vmem:[%s1539_s17 + $0x4f0] sm:$0xff] %v810_v37  ;;  %v579_v37 = vand.u32 2147483647, %v323_v29  ;;  %v833_v42 = vmul.f32 5.0, %v577_v31  ;;  %v345_v31 = vld [vmem:[%s1526_s24 + $0x668] sm:$0xff] }
  0xcd   : > { %1067 = vst [vmem:[%s1539_s17 + $0x4f8] sm:$0xff] %v811_v40  ;;  %v580_v40 = vand.u32 2147483647, %v324_v32  ;;  %v834_v45 = vmul.f32 5.0, %v578_v34  ;;  %v346_v34 = vld [vmem:[%s1526_s24 + $0x670] sm:$0xff] }
  0xce   : > { %1068 = vst [vmem:[%s1539_s17 + $0x500] sm:$0xff] %v812_v43  ;;  %v581_v43 = vand.u32 2147483647, %v325_v35  ;;  %v835_v48 = vmul.f32 5.0, %v579_v37  ;;  %v347_v37 = vld [vmem:[%s1526_s24 + $0x678] sm:$0xff] }
  0xcf   : > { %1069 = vst [vmem:[%s1539_s17 + $0x508] sm:$0xff] %v813_v46  ;;  %v582_v46 = vand.u32 2147483647, %v326_v38  ;;  %v836_v51 = vmul.f32 5.0, %v580_v40  ;;  %v348_v40 = vld [vmem:[%s1526_s24 + $0x680] sm:$0xff] }
  0xd0   : > { %1070 = vst [vmem:[%s1539_s17 + $0x510] sm:$0xff] %v814_v49  ;;  %v583_v49 = vand.u32 2147483647, %v327_v41  ;;  %v837_v54 = vmul.f32 5.0, %v581_v43  ;;  %v349_v43 = vld [vmem:[%s1526_s24 + $0x688] sm:$0xff] }
  0xd1   : > { %1071 = vst [vmem:[%s1539_s17 + $0x518] sm:$0xff] %v815_v52  ;;  %v584_v52 = vand.u32 2147483647, %v328_v44  ;;  %v838_v57 = vmul.f32 5.0, %v582_v46  ;;  %v350_v46 = vld [vmem:[%s1526_s24 + $0x690] sm:$0xff] }
  0xd2   : > { %1072 = vst [vmem:[%s1539_s17 + $0x520] sm:$0xff] %v816_v55  ;;  %v585_v55 = vand.u32 2147483647, %v329_v47  ;;  %v839_v60 = vmul.f32 5.0, %v583_v49  ;;  %v351_v49 = vld [vmem:[%s1526_s24 + $0x698] sm:$0xff] }
  0xd3   : > { %1073 = vst [vmem:[%s1539_s17 + $0x528] sm:$0xff] %v817_v58  ;;  %v586_v58 = vand.u32 2147483647, %v330_v50  ;;  %v840_v63 = vmul.f32 5.0, %v584_v52  ;;  %v352_v52 = vld [vmem:[%s1526_s24 + $0x6a0] sm:$0xff] }
  0xd4   : > { %1074 = vst [vmem:[%s1539_s17 + $0x530] sm:$0xff] %v818_v61  ;;  %v587_v61 = vand.u32 2147483647, %v331_v53  ;;  %v841_v2 = vmul.f32 5.0, %v585_v55  ;;  %v353_v55 = vld [vmem:[%s1526_s24 + $0x6a8] sm:$0xff] }
  0xd5   : > { %1075 = vst [vmem:[%s1539_s17 + $0x538] sm:$0xff] %v819_v0  ;;  %v588_v0 = vand.u32 2147483647, %v332_v56  ;;  %v842_v5 = vmul.f32 5.0, %v586_v58  ;;  %v354_v58 = vld [vmem:[%s1526_s24 + $0x6b0] sm:$0xff] }
  0xd6   : > { %1076 = vst [vmem:[%s1539_s17 + $0x540] sm:$0xff] %v820_v3  ;;  %v589_v3 = vand.u32 2147483647, %v333_v59  ;;  %v843_v8 = vmul.f32 5.0, %v587_v61  ;;  %v355_v61 = vld [vmem:[%s1526_s24 + $0x6b8] sm:$0xff] }
  0xd7   : > { %1077 = vst [vmem:[%s1539_s17 + $0x548] sm:$0xff] %v821_v6  ;;  %v590_v6 = vand.u32 2147483647, %v334_v62  ;;  %v844_v11 = vmul.f32 5.0, %v588_v0  ;;  %v356_v0 = vld [vmem:[%s1526_s24 + $0x6c0] sm:$0xff] }
  0xd8   : > { %1078 = vst [vmem:[%s1539_s17 + $0x550] sm:$0xff] %v822_v9  ;;  %v591_v9 = vand.u32 2147483647, %v335_v1  ;;  %v845_v14 = vmul.f32 5.0, %v589_v3  ;;  %v357_v3 = vld [vmem:[%s1526_s24 + $0x6c8] sm:$0xff] }
  0xd9   : > { %1079 = vst [vmem:[%s1539_s17 + $0x558] sm:$0xff] %v823_v12  ;;  %v592_v12 = vand.u32 2147483647, %v336_v4  ;;  %v846_v17 = vmul.f32 5.0, %v590_v6  ;;  %v358_v6 = vld [vmem:[%s1526_s24 + $0x6d0] sm:$0xff] }
  0xda   : > { %1080 = vst [vmem:[%s1539_s17 + $0x560] sm:$0xff] %v824_v15  ;;  %v593_v15 = vand.u32 2147483647, %v337_v7  ;;  %v847_v20 = vmul.f32 5.0, %v591_v9  ;;  %v359_v9 = vld [vmem:[%s1526_s24 + $0x6d8] sm:$0xff] }
  0xdb   : > { %1081 = vst [vmem:[%s1539_s17 + $0x568] sm:$0xff] %v825_v18  ;;  %v594_v18 = vand.u32 2147483647, %v338_v10  ;;  %v848_v23 = vmul.f32 5.0, %v592_v12  ;;  %v360_v12 = vld [vmem:[%s1526_s24 + $0x6e0] sm:$0xff] }
  0xdc   : > { %1082 = vst [vmem:[%s1539_s17 + $0x570] sm:$0xff] %v826_v21  ;;  %v595_v21 = vand.u32 2147483647, %v339_v13  ;;  %v849_v26 = vmul.f32 5.0, %v593_v15  ;;  %v361_v15 = vld [vmem:[%s1526_s24 + $0x6e8] sm:$0xff] }
  0xdd   : > { %1083 = vst [vmem:[%s1539_s17 + $0x578] sm:$0xff] %v827_v24  ;;  %v596_v24 = vand.u32 2147483647, %v340_v16  ;;  %v850_v29 = vmul.f32 5.0, %v594_v18  ;;  %v362_v18 = vld [vmem:[%s1526_s24 + $0x6f0] sm:$0xff] }
  0xde   : > { %1084 = vst [vmem:[%s1539_s17 + $0x580] sm:$0xff] %v828_v27  ;;  %v597_v27 = vand.u32 2147483647, %v341_v19  ;;  %v851_v32 = vmul.f32 5.0, %v595_v21  ;;  %v363_v21 = vld [vmem:[%s1526_s24 + $0x6f8] sm:$0xff] }
  0xdf   : > { %1085 = vst [vmem:[%s1539_s17 + $0x588] sm:$0xff] %v829_v30  ;;  %v598_v30 = vand.u32 2147483647, %v342_v22  ;;  %v852_v35 = vmul.f32 5.0, %v596_v24  ;;  %v364_v24 = vld [vmem:[%s1526_s24 + $0x700] sm:$0xff] }
  0xe0   : > { %1086 = vst [vmem:[%s1539_s17 + $0x590] sm:$0xff] %v830_v33  ;;  %v599_v33 = vand.u32 2147483647, %v343_v25  ;;  %v853_v38 = vmul.f32 5.0, %v597_v27  ;;  %v365_v27 = vld [vmem:[%s1526_s24 + $0x708] sm:$0xff] }
  0xe1   : > { %1087 = vst [vmem:[%s1539_s17 + $0x598] sm:$0xff] %v831_v36  ;;  %v600_v36 = vand.u32 2147483647, %v344_v28  ;;  %v854_v41 = vmul.f32 5.0, %v598_v30  ;;  %v366_v30 = vld [vmem:[%s1526_s24 + $0x710] sm:$0xff] }
  0xe2   : > { %1088 = vst [vmem:[%s1539_s17 + $0x5a0] sm:$0xff] %v832_v39  ;;  %v601_v39 = vand.u32 2147483647, %v345_v31  ;;  %v855_v44 = vmul.f32 5.0, %v599_v33  ;;  %v367_v33 = vld [vmem:[%s1526_s24 + $0x718] sm:$0xff] }
  0xe3   : > { %1089 = vst [vmem:[%s1539_s17 + $0x5a8] sm:$0xff] %v833_v42  ;;  %v602_v42 = vand.u32 2147483647, %v346_v34  ;;  %v856_v47 = vmul.f32 5.0, %v600_v36  ;;  %v368_v36 = vld [vmem:[%s1526_s24 + $0x720] sm:$0xff] }
  0xe4   : > { %1090 = vst [vmem:[%s1539_s17 + $0x5b0] sm:$0xff] %v834_v45  ;;  %v603_v45 = vand.u32 2147483647, %v347_v37  ;;  %v857_v50 = vmul.f32 5.0, %v601_v39  ;;  %v369_v39 = vld [vmem:[%s1526_s24 + $0x728] sm:$0xff] }
  0xe5   : > { %1091 = vst [vmem:[%s1539_s17 + $0x5b8] sm:$0xff] %v835_v48  ;;  %v604_v48 = vand.u32 2147483647, %v348_v40  ;;  %v858_v53 = vmul.f32 5.0, %v602_v42  ;;  %v370_v42 = vld [vmem:[%s1526_s24 + $0x730] sm:$0xff] }
  0xe6   : > { %1092 = vst [vmem:[%s1539_s17 + $0x5c0] sm:$0xff] %v836_v51  ;;  %v605_v51 = vand.u32 2147483647, %v349_v43  ;;  %v859_v56 = vmul.f32 5.0, %v603_v45  ;;  %v371_v45 = vld [vmem:[%s1526_s24 + $0x738] sm:$0xff] }
  0xe7   : > { %1093 = vst [vmem:[%s1539_s17 + $0x5c8] sm:$0xff] %v837_v54  ;;  %v606_v54 = vand.u32 2147483647, %v350_v46  ;;  %v860_v59 = vmul.f32 5.0, %v604_v48  ;;  %v372_v48 = vld [vmem:[%s1526_s24 + $0x740] sm:$0xff] }
  0xe8   : > { %1094 = vst [vmem:[%s1539_s17 + $0x5d0] sm:$0xff] %v838_v57  ;;  %v607_v57 = vand.u32 2147483647, %v351_v49  ;;  %v861_v62 = vmul.f32 5.0, %v605_v51  ;;  %v373_v51 = vld [vmem:[%s1526_s24 + $0x748] sm:$0xff] }
  0xe9   : > { %1095 = vst [vmem:[%s1539_s17 + $0x5d8] sm:$0xff] %v839_v60  ;;  %v608_v60 = vand.u32 2147483647, %v352_v52  ;;  %v862_v1 = vmul.f32 5.0, %v606_v54  ;;  %v374_v54 = vld [vmem:[%s1526_s24 + $0x750] sm:$0xff] }
  0xea   : > { %1096 = vst [vmem:[%s1539_s17 + $0x5e0] sm:$0xff] %v840_v63  ;;  %v609_v63 = vand.u32 2147483647, %v353_v55  ;;  %v863_v4 = vmul.f32 5.0, %v607_v57  ;;  %v375_v57 = vld [vmem:[%s1526_s24 + $0x758] sm:$0xff] }
  0xeb   : > { %1097 = vst [vmem:[%s1539_s17 + $0x5e8] sm:$0xff] %v841_v2  ;;  %v610_v2 = vand.u32 2147483647, %v354_v58  ;;  %v864_v7 = vmul.f32 5.0, %v608_v60  ;;  %v376_v60 = vld [vmem:[%s1526_s24 + $0x760] sm:$0xff] }
  0xec   : > { %1098 = vst [vmem:[%s1539_s17 + $0x5f0] sm:$0xff] %v842_v5  ;;  %v611_v5 = vand.u32 2147483647, %v355_v61  ;;  %v865_v10 = vmul.f32 5.0, %v609_v63  ;;  %v377_v63 = vld [vmem:[%s1526_s24 + $0x768] sm:$0xff] }
  0xed   : > { %1099 = vst [vmem:[%s1539_s17 + $0x5f8] sm:$0xff] %v843_v8  ;;  %v612_v8 = vand.u32 2147483647, %v356_v0  ;;  %v866_v13 = vmul.f32 5.0, %v610_v2  ;;  %v378_v2 = vld [vmem:[%s1526_s24 + $0x770] sm:$0xff] }
  0xee   : > { %1100 = vst [vmem:[%s1539_s17 + $0x600] sm:$0xff] %v844_v11  ;;  %v613_v11 = vand.u32 2147483647, %v357_v3  ;;  %v867_v16 = vmul.f32 5.0, %v611_v5  ;;  %v379_v5 = vld [vmem:[%s1526_s24 + $0x778] sm:$0xff] }
  0xef   : > { %1101 = vst [vmem:[%s1539_s17 + $0x608] sm:$0xff] %v845_v14  ;;  %v614_v14 = vand.u32 2147483647, %v358_v6  ;;  %v868_v19 = vmul.f32 5.0, %v612_v8  ;;  %v380_v8 = vld [vmem:[%s1526_s24 + $0x780] sm:$0xff] }
  0xf0   : > { %1102 = vst [vmem:[%s1539_s17 + $0x610] sm:$0xff] %v846_v17  ;;  %v615_v17 = vand.u32 2147483647, %v359_v9  ;;  %v869_v22 = vmul.f32 5.0, %v613_v11  ;;  %v381_v11 = vld [vmem:[%s1526_s24 + $0x788] sm:$0xff] }
  0xf1   : > { %1103 = vst [vmem:[%s1539_s17 + $0x618] sm:$0xff] %v847_v20  ;;  %v616_v20 = vand.u32 2147483647, %v360_v12  ;;  %v870_v25 = vmul.f32 5.0, %v614_v14  ;;  %v382_v14 = vld [vmem:[%s1526_s24 + $0x790] sm:$0xff] }
  0xf2   : > { %1104 = vst [vmem:[%s1539_s17 + $0x620] sm:$0xff] %v848_v23  ;;  %v617_v23 = vand.u32 2147483647, %v361_v15  ;;  %v871_v28 = vmul.f32 5.0, %v615_v17  ;;  %v383_v17 = vld [vmem:[%s1526_s24 + $0x798] sm:$0xff] }
  0xf3   : > { %1105 = vst [vmem:[%s1539_s17 + $0x628] sm:$0xff] %v849_v26  ;;  %v618_v26 = vand.u32 2147483647, %v362_v18  ;;  %v872_v31 = vmul.f32 5.0, %v616_v20  ;;  %v384_v20 = vld [vmem:[%s1526_s24 + $0x7a0] sm:$0xff] }
  0xf4   : > { %1106 = vst [vmem:[%s1539_s17 + $0x630] sm:$0xff] %v850_v29  ;;  %v619_v29 = vand.u32 2147483647, %v363_v21  ;;  %v873_v34 = vmul.f32 5.0, %v617_v23  ;;  %v385_v23 = vld [vmem:[%s1526_s24 + $0x7a8] sm:$0xff] }
  0xf5   : > { %1107 = vst [vmem:[%s1539_s17 + $0x638] sm:$0xff] %v851_v32  ;;  %v620_v32 = vand.u32 2147483647, %v364_v24  ;;  %v874_v37 = vmul.f32 5.0, %v618_v26  ;;  %v386_v26 = vld [vmem:[%s1526_s24 + $0x7b0] sm:$0xff] }
  0xf6   : > { %1108 = vst [vmem:[%s1539_s17 + $0x640] sm:$0xff] %v852_v35  ;;  %v621_v35 = vand.u32 2147483647, %v365_v27  ;;  %v875_v40 = vmul.f32 5.0, %v619_v29  ;;  %v387_v29 = vld [vmem:[%s1526_s24 + $0x7b8] sm:$0xff] }
  0xf7   : > { %1109 = vst [vmem:[%s1539_s17 + $0x648] sm:$0xff] %v853_v38  ;;  %v622_v38 = vand.u32 2147483647, %v366_v30  ;;  %v876_v43 = vmul.f32 5.0, %v620_v32  ;;  %v388_v32 = vld [vmem:[%s1526_s24 + $0x7c0] sm:$0xff] }
  0xf8   : > { %1110 = vst [vmem:[%s1539_s17 + $0x650] sm:$0xff] %v854_v41  ;;  %v623_v41 = vand.u32 2147483647, %v367_v33  ;;  %v877_v46 = vmul.f32 5.0, %v621_v35  ;;  %v389_v35 = vld [vmem:[%s1526_s24 + $0x7c8] sm:$0xff] }
  0xf9   : > { %1111 = vst [vmem:[%s1539_s17 + $0x658] sm:$0xff] %v855_v44  ;;  %v624_v44 = vand.u32 2147483647, %v368_v36  ;;  %v878_v49 = vmul.f32 5.0, %v622_v38  ;;  %v390_v38 = vld [vmem:[%s1526_s24 + $0x7d0] sm:$0xff] }
  0xfa   : > { %1112 = vst [vmem:[%s1539_s17 + $0x660] sm:$0xff] %v856_v47  ;;  %v625_v47 = vand.u32 2147483647, %v369_v39  ;;  %v879_v52 = vmul.f32 5.0, %v623_v41  ;;  %v391_v41 = vld [vmem:[%s1526_s24 + $0x7d8] sm:$0xff] }
  0xfb   : > { %1113 = vst [vmem:[%s1539_s17 + $0x668] sm:$0xff] %v857_v50  ;;  %v626_v50 = vand.u32 2147483647, %v370_v42  ;;  %v880_v55 = vmul.f32 5.0, %v624_v44  ;;  %v392_v44 = vld [vmem:[%s1526_s24 + $0x7e0] sm:$0xff] }
  0xfc   : > { %1114 = vst [vmem:[%s1539_s17 + $0x670] sm:$0xff] %v858_v53  ;;  %v627_v53 = vand.u32 2147483647, %v371_v45  ;;  %v881_v58 = vmul.f32 5.0, %v625_v47  ;;  %v393_v47 = vld [vmem:[%s1526_s24 + $0x7e8] sm:$0xff] }
  0xfd   : > { %1115 = vst [vmem:[%s1539_s17 + $0x678] sm:$0xff] %v859_v56  ;;  %v628_v56 = vand.u32 2147483647, %v372_v48  ;;  %v882_v61 = vmul.f32 5.0, %v626_v50  ;;  %v394_v50 = vld [vmem:[%s1526_s24 + $0x7f0] sm:$0xff] }
  0xfe   : > { %1116 = vst [vmem:[%s1539_s17 + $0x680] sm:$0xff] %v860_v59  ;;  %v629_v59 = vand.u32 2147483647, %v373_v51  ;;  %v883_v0 = vmul.f32 5.0, %v627_v53  ;;  %v395_v53 = vld [vmem:[%s1526_s24 + $0x7f8] sm:$0xff] }
  0xff   : > { %1117 = vst [vmem:[%s1539_s17 + $0x688] sm:$0xff] %v861_v62  ;;  %v630_v62 = vand.u32 2147483647, %v374_v54  ;;  %v884_v3 = vmul.f32 5.0, %v628_v56 }
 0x100   : > { %1118 = vst [vmem:[%s1539_s17 + $0x690] sm:$0xff] %v862_v1  ;;  %v631_v1 = vand.u32 2147483647, %v375_v57  ;;  %v885_v6 = vmul.f32 5.0, %v629_v59  ;;  %v650_v57 = vand.u32 2147483647, %v394_v50 }
 0x101   : > { %1119 = vst [vmem:[%s1539_s17 + $0x698] sm:$0xff] %v863_v4  ;;  %v632_v4 = vand.u32 2147483647, %v376_v60  ;;  %v886_v9 = vmul.f32 5.0, %v630_v62  ;;  %v651_v59 = vand.u32 2147483647, %v395_v53 }
 0x102   : > { %1120 = vst [vmem:[%s1539_s17 + $0x6a0] sm:$0xff] %v864_v7  ;;  %v633_v7 = vand.u32 2147483647, %v377_v63  ;;  %v887_v12 = vmul.f32 5.0, %v631_v1  ;;  %v906_v62 = vmul.f32 5.0, %v650_v57 }
 0x103   : > { %1121 = vst [vmem:[%s1539_s17 + $0x6a8] sm:$0xff] %v865_v10  ;;  %v634_v10 = vand.u32 2147483647, %v378_v2  ;;  %v888_v15 = vmul.f32 5.0, %v632_v4  ;;  %v907_v63 = vmul.f32 5.0, %v651_v59 }
 0x104   : > { %1122 = vst [vmem:[%s1539_s17 + $0x6b0] sm:$0xff] %v866_v13  ;;  %v635_v13 = vand.u32 2147483647, %v379_v5  ;;  %v889_v18 = vmul.f32 5.0, %v633_v7 }
 0x105   : > { %1123 = vst [vmem:[%s1539_s17 + $0x6b8] sm:$0xff] %v867_v16  ;;  %v636_v16 = vand.u32 2147483647, %v380_v8  ;;  %v890_v21 = vmul.f32 5.0, %v634_v10 }
 0x106   : > { %1124 = vst [vmem:[%s1539_s17 + $0x6c0] sm:$0xff] %v868_v19  ;;  %v637_v19 = vand.u32 2147483647, %v381_v11  ;;  %v891_v24 = vmul.f32 5.0, %v635_v13 }
 0x107   : > { %1125 = vst [vmem:[%s1539_s17 + $0x6c8] sm:$0xff] %v869_v22  ;;  %v638_v22 = vand.u32 2147483647, %v382_v14  ;;  %v892_v27 = vmul.f32 5.0, %v636_v16 }
 0x108   : > { %1126 = vst [vmem:[%s1539_s17 + $0x6d0] sm:$0xff] %v870_v25  ;;  %v639_v25 = vand.u32 2147483647, %v383_v17  ;;  %v893_v30 = vmul.f32 5.0, %v637_v19 }
 0x109   : > { %1127 = vst [vmem:[%s1539_s17 + $0x6d8] sm:$0xff] %v871_v28  ;;  %v640_v28 = vand.u32 2147483647, %v384_v20  ;;  %v894_v33 = vmul.f32 5.0, %v638_v22 }
 0x10a   : > { %1128 = vst [vmem:[%s1539_s17 + $0x6e0] sm:$0xff] %v872_v31  ;;  %v641_v31 = vand.u32 2147483647, %v385_v23  ;;  %v895_v36 = vmul.f32 5.0, %v639_v25 }
 0x10b   : > { %1129 = vst [vmem:[%s1539_s17 + $0x6e8] sm:$0xff] %v873_v34  ;;  %v642_v34 = vand.u32 2147483647, %v386_v26  ;;  %v896_v39 = vmul.f32 5.0, %v640_v28 }
 0x10c   : > { %1130 = vst [vmem:[%s1539_s17 + $0x6f0] sm:$0xff] %v874_v37  ;;  %v643_v37 = vand.u32 2147483647, %v387_v29  ;;  %v897_v42 = vmul.f32 5.0, %v641_v31 }
 0x10d   : > { %1131 = vst [vmem:[%s1539_s17 + $0x6f8] sm:$0xff] %v875_v40  ;;  %v644_v40 = vand.u32 2147483647, %v388_v32  ;;  %v898_v45 = vmul.f32 5.0, %v642_v34 }
 0x10e   : > { %1132 = vst [vmem:[%s1539_s17 + $0x700] sm:$0xff] %v876_v43  ;;  %v645_v43 = vand.u32 2147483647, %v389_v35  ;;  %v899_v48 = vmul.f32 5.0, %v643_v37 }
 0x10f   : > { %1133 = vst [vmem:[%s1539_s17 + $0x708] sm:$0xff] %v877_v46  ;;  %v646_v46 = vand.u32 2147483647, %v390_v38  ;;  %v900_v51 = vmul.f32 5.0, %v644_v40 }
 0x110   : > { %1134 = vst [vmem:[%s1539_s17 + $0x710] sm:$0xff] %v878_v49  ;;  %v647_v49 = vand.u32 2147483647, %v391_v41  ;;  %v901_v54 = vmul.f32 5.0, %v645_v43 }
 0x111   : > { %1135 = vst [vmem:[%s1539_s17 + $0x718] sm:$0xff] %v879_v52  ;;  %v648_v52 = vand.u32 2147483647, %v392_v44  ;;  %v902_v56 = vmul.f32 5.0, %v646_v46 }
 0x112   : > { %1136 = vst [vmem:[%s1539_s17 + $0x720] sm:$0xff] %v880_v55  ;;  %v649_v55 = vand.u32 2147483647, %v393_v47 }
 0x113   : > { %1137 = vst [vmem:[%s1539_s17 + $0x728] sm:$0xff] %v881_v58  ;;  %v903_v58 = vmul.f32 5.0, %v647_v49  ;;  %v904_v60 = vmul.f32 5.0, %v648_v52 }
 0x114   : > { %1138 = vst [vmem:[%s1539_s17 + $0x730] sm:$0xff] %v882_v61  ;;  %v905_v61 = vmul.f32 5.0, %v649_v55 }
 0x115   : > { %1139 = vst [vmem:[%s1539_s17 + $0x738] sm:$0xff] %v883_v0 }
 0x116   : > { %1140 = vst [vmem:[%s1539_s17 + $0x740] sm:$0xff] %v884_v3 }
 0x117   : > { %1141 = vst [vmem:[%s1539_s17 + $0x748] sm:$0xff] %v885_v6 }
 0x118   : > { %1142 = vst [vmem:[%s1539_s17 + $0x750] sm:$0xff] %v886_v9 }
 0x119   : > { %1143 = vst [vmem:[%s1539_s17 + $0x758] sm:$0xff] %v887_v12 }
 0x11a   : > { %1144 = vst [vmem:[%s1539_s17 + $0x760] sm:$0xff] %v888_v15 }
 0x11b   : > { %1145 = vst [vmem:[%s1539_s17 + $0x768] sm:$0xff] %v889_v18 }
 0x11c   : > { %1146 = vst [vmem:[%s1539_s17 + $0x770] sm:$0xff] %v890_v21 }
 0x11d   : > { %1147 = vst [vmem:[%s1539_s17 + $0x778] sm:$0xff] %v891_v24 }
 0x11e   : > { %1148 = vst [vmem:[%s1539_s17 + $0x780] sm:$0xff] %v892_v27 }
 0x11f   : > { %1149 = vst [vmem:[%s1539_s17 + $0x788] sm:$0xff] %v893_v30 }
 0x120   : > { %1150 = vst [vmem:[%s1539_s17 + $0x790] sm:$0xff] %v894_v33 }
 0x121   : > { %1151 = vst [vmem:[%s1539_s17 + $0x798] sm:$0xff] %v895_v36 }
 0x122   : > { %1152 = vst [vmem:[%s1539_s17 + $0x7a0] sm:$0xff] %v896_v39 }
 0x123   : > { %1153 = vst [vmem:[%s1539_s17 + $0x7a8] sm:$0xff] %v897_v42 }
 0x124   : > { %1154 = vst [vmem:[%s1539_s17 + $0x7b0] sm:$0xff] %v898_v45 }
 0x125   : > { %1155 = vst [vmem:[%s1539_s17 + $0x7b8] sm:$0xff] %v899_v48 }
 0x126   : > { %1156 = vst [vmem:[%s1539_s17 + $0x7c0] sm:$0xff] %v900_v51 }
 0x127   : > { %1157 = vst [vmem:[%s1539_s17 + $0x7c8] sm:$0xff] %v901_v54 }
 0x128   : > { %1158 = vst [vmem:[%s1539_s17 + $0x7d0] sm:$0xff] %v902_v56 }
 0x129   : > { %1159 = vst [vmem:[%s1539_s17 + $0x7d8] sm:$0xff] %v903_v58 }
 0x12a   : > { %1160 = vst [vmem:[%s1539_s17 + $0x7e0] sm:$0xff] %v904_v60 }
 0x12b   : > { %1161 = vst [vmem:[%s1539_s17 + $0x7e8] sm:$0xff] %v905_v61 }
 0x12c   : > { %1162 = vst [vmem:[%s1539_s17 + $0x7f0] sm:$0xff] %v906_v62 }
 0x12d   : > { %1163 = vst [vmem:[%s1539_s17 + $0x7f8] sm:$0xff] %v907_v63 }
 0x12e   : > { %1381 = shalt.err (!%p1378_p4)
}
 0x12f   : > { %s1424_s16 = smov 512   ;;  %s1425_s20 = smov 32  }
 0x130   : > { %1276 = dma.vmem_to_hbm [thread:$0]  (%p1486_p11), %s1179_s10, 32768, %s1181_s29, %s1165_s30, %s1424_s16, %s1424_s16, %s1425_s20  }
 0x131 PF: > { %s1195_s21 = sand.u32 1, %s1408_s6   ;;  %p2087_p7 = scmp.ge.s32.totalorder %s1420_s9, 2 }
 0x132   : > { %s1196_s22 = scalar_lea.sflag [#allocation4], %s1195_s21 }
 0x133   : > { %p1283_p5 = pnand %p2087_p7, %p1490_p12 }
 0x135   : > { %p1284_p8 = pneg %p1283_p5 }
 0x137   : > { %1403 = dma.done.wait (%p1284_p8), %s1196_s22, 32768  }
 0x138   : > { %1405 = vsyncadd (%p1284_p8), %s1196_s22, 4294934528  ;;  %p14_p10 = scmp.ge.s32.totalorder %s1461_s12, 4   ;;  %s2088_s6 = smov %s1412_s7 }
 0x139   : > { %s2089_s7 = smov %s1416_s8  ;;  %s2090_s8 = smov %s1473_s15 }
 0x13a   : > { %s2091_s9 = smov %s1461_s12  ;;  %16 = sbr.rel (!%p14_p10) target bundleno = 5 (0x5), region = 69 }
 0x13f   :  { %1202 = vsyncpa [#allocation3], 1 }
 0x140   :  { %1204 = vsyncpa [#allocation3 + $0x1], 1 }
 0x141   :  { %1205 = vsyncpa [#allocation4], 1 }
 0x142   :  { %1207 = vsyncpa [#allocation4 + $0x1], 1 }

</bundles_post_ra>
